<compile_context>
chip_gen: v7x
topology: tpu7x:2x2x1
jax: 0.10.0
libtpu: 0.0.40
codegen_flags: <defaults>
</compile_context>

<pallas_src>
import jax
import jax.numpy as jnp
from jax.experimental import pallas as pl
from jax.experimental.pallas import tpu as pltpu

# ----- model hyperparameters (from the PyTorch module) -----------------------
block_size = 10
n_embd = 24
n_hidden = 150
vocab_size = 30          # stands in for len(itos) from cities_raw.csv

# lane-dense padded sizes (TPU lane width = 128)
HPAD = 256               # n_hidden 150 -> 256
VPAD = 128               # vocab_size 30 -> 128

_NEG_BIG = -1e30
_HI = jax.lax.Precision.HIGHEST


def _round_up(x, m):
    return ((x + m - 1) // m) * m


# ----- Pallas kernels ---------------------------------------------------------
def _mlp_logits(tok, w1e_ref, b1_ref, w2_ref, b2_ref):
    """Fused embedding-gather + Linear(240,150) + Linear(150,V) on padded lanes."""
    tb = tok.shape[0]
    lane_v = jax.lax.broadcasted_iota(jnp.int32, (tb, VPAD), 1)
    acc = jnp.zeros((tb, HPAD), jnp.float32)
    for t in range(block_size):                       # static: 10 small MXU matmuls
        oh = (lane_v == tok[:, t:t + 1]).astype(jnp.bfloat16)   # (tb, VPAD) one-hot
        acc = acc + jnp.dot(oh, w1e_ref[t], preferred_element_type=jnp.float32)
    h = acc + b1_ref[...]                             # (tb, HPAD) f32 (padded lanes = 0)
    logits = jnp.dot(h.astype(jnp.bfloat16), w2_ref[...],
                     preferred_element_type=jnp.float32) + b2_ref[...]
    return logits                                     # (tb, VPAD) f32, lane-dense


def _train_kernel(tok_ref, tgt_ref, w1e_ref, b1_ref, w2_ref, b2_ref,
                  logits_ref, loss_ref):
    logits = _mlp_logits(tok_ref[...], w1e_ref, b1_ref, w2_ref, b2_ref)
    logits_ref[...] = logits                          # full (tb, 128) unmasked store

    # cross-entropy with padded vocab lanes excluded from the logsumexp
    lane_v = jax.lax.broadcasted_iota(jnp.int32, logits.shape, 1)
    tgt = tgt_ref[...]                                # (tb, 1) int32; -1 => padded row
    lm = jnp.where(lane_v < vocab_size, logits, _NEG_BIG)
    m = jnp.max(lm, axis=-1, keepdims=True)
    lse = m + jnp.log(jnp.sum(jnp.exp(lm - m), axis=-1, keepdims=True))
    picked = jnp.sum(jnp.where(lane_v == tgt, logits, 0.0), axis=-1, keepdims=True)
    valid = (tgt >= 0).astype(jnp.float32)
    loss_ref[...] = (lse - picked) * valid            # per-example loss (tb, 1)


def _infer_kernel(tok_ref, w1e_ref, b1_ref, w2_ref, b2_ref, logits_ref):
    logits_ref[...] = _mlp_logits(tok_ref[...], w1e_ref, b1_ref, w2_ref, b2_ref)


# ----- kernel-side parameter preparation (pad + fuse, done once) ---------------
def prepare_kernel_params(params):
    emb, w1, b1, w2, b2 = (params["emb"], params["w1"], params["b1"],
                           params["w2"], params["b2"])
    emb_p = jnp.zeros((VPAD, n_embd), jnp.float32).at[:vocab_size].set(emb)
    w1_r = w1.reshape(block_size, n_embd, n_hidden)   # row-major Flatten order: [t, e]
    # fused (gather ∘ Linear1) weight: per token slot, (VPAD, n_hidden)
    w1e = jnp.einsum("ve,teh->tvh", emb_p, w1_r, precision=_HI)
    w1e = jnp.pad(w1e, ((0, 0), (0, 0), (0, HPAD - n_hidden))).astype(jnp.bfloat16)
    b1_p = jnp.pad(b1, ((0, 0), (0, HPAD - n_hidden))).astype(jnp.float32)
    w2_p = jnp.pad(w2, ((0, HPAD - n_hidden), (0, VPAD - vocab_size))).astype(jnp.bfloat16)
    b2_p = jnp.pad(b2, ((0, 0), (0, VPAD - vocab_size))).astype(jnp.float32)
    return w1e, b1_p, w2_p, b2_p


def _weight_specs():
    return [
        pl.BlockSpec((block_size, VPAD, HPAD), lambda i: (0, 0, 0)),   # w1e (resident)
        pl.BlockSpec((1, HPAD), lambda i: (0, 0)),                     # b1
        pl.BlockSpec((HPAD, VPAD), lambda i: (0, 0)),                  # w2
        pl.BlockSpec((1, VPAD), lambda i: (0, 0)),                     # b2
    ]


def _call_train(tokens_p, targets_p, w1e, b1_p, w2_p, b2_p, tb):
    b_pad = tokens_p.shape[0]
    grid_spec = pltpu.PrefetchScalarGridSpec(
        num_scalar_prefetch=0,
        grid=(b_pad // tb,),
        in_specs=[pl.BlockSpec((tb, block_size), lambda i: (i, 0)),
                  pl.BlockSpec((tb, 1), lambda i: (i, 0))] + _weight_specs(),
        out_specs=(pl.BlockSpec((tb, VPAD), lambda i: (i, 0)),
                   pl.BlockSpec((tb, 1), lambda i: (i, 0))),
    )
    return pl.pallas_call(
        _train_kernel,
        out_shape=(jax.ShapeDtypeStruct((b_pad, VPAD), jnp.float32),
                   jax.ShapeDtypeStruct((b_pad, 1), jnp.float32)),
        grid_spec=grid_spec,
        compiler_params=pltpu.CompilerParams(dimension_semantics=("parallel",)),
    )(tokens_p, targets_p, w1e, b1_p, w2_p, b2_p)


def _call_infer(tokens_p, w1e, b1_p, w2_p, b2_p, tb):
    b_pad = tokens_p.shape[0]
    grid_spec = pltpu.PrefetchScalarGridSpec(
        num_scalar_prefetch=0,
        grid=(b_pad // tb,),
        in_specs=[pl.BlockSpec((tb, block_size), lambda i: (i, 0))] + _weight_specs(),
        out_specs=pl.BlockSpec((tb, VPAD), lambda i: (i, 0)),
    )
    return pl.pallas_call(
        _infer_kernel,
        out_shape=jax.ShapeDtypeStruct((b_pad, VPAD), jnp.float32),
        grid_spec=grid_spec,
        compiler_params=pltpu.CompilerParams(dimension_semantics=("parallel",)),
    )(tokens_p, w1e, b1_p, w2_p, b2_p)


# ----- parameter init (deterministic, mirrors the PyTorch shapes) -------------
def init_params(key):
    k_emb, k_w1, k_b1, k_w2, k_b2 = jax.random.split(key, 5)
    emb = jax.random.normal(k_emb, (vocab_size, n_embd), jnp.float32)   # nn.Embedding

    fan_in1 = n_embd * block_size
    bound1 = 1.0 / jnp.sqrt(fan_in1)
    w1 = jax.random.uniform(k_w1, (fan_in1, n_hidden), jnp.float32, -bound1, bound1)
    b1 = jax.random.uniform(k_b1, (1, n_hidden), jnp.float32, -bound1, bound1)

    fan_in2 = n_hidden
    bound2 = 1.0 / jnp.sqrt(fan_in2)
    w2 = jax.random.uniform(k_w2, (fan_in2, vocab_size), jnp.float32, -bound2, bound2)
    w2 = w2 * 0.1                                       # self.net[-1].weight *= 0.1
    b2 = jax.random.uniform(k_b2, (1, vocab_size), jnp.float32, -bound2, bound2)

    return {"emb": emb, "w1": w1, "b1": b1, "w2": w2, "b2": b2}


# ----- forward wrapper (matches FinalMLP.forward semantics) --------------------
def final_mlp_forward(params, tokens, targets=None, *, batch_tile=256):
    batch = tokens.shape[0]
    # batch tile: multiple of 8 sublanes; default 256 rows is well inside v7x's 64 MiB
    # VMEM even with double-buffering (tokens/logits tiles are a few hundred KiB).
    tb = max(8, min(_round_up(int(batch_tile), 8), _round_up(batch, 8)))
    b_pad = _round_up(batch, tb)

    tokens_p = jnp.zeros((b_pad, block_size), jnp.int32).at[:batch].set(
        tokens.astype(jnp.int32))

    w1e, b1_p, w2_p, b2_p = prepare_kernel_params(params)

    if targets is None:
        logits_pad = _call_infer(tokens_p, w1e, b1_p, w2_p, b2_p, tb)
        return logits_pad[:batch, :vocab_size], None

    targets_p = jnp.full((b_pad, 1), -1, jnp.int32).at[:batch, 0].set(
        targets.astype(jnp.int32))
    logits_pad, per_example = _call_train(tokens_p, targets_p,
                                          w1e, b1_p, w2_p, b2_p, tb)
    loss = jnp.sum(per_example) / batch               # global-batch mean (pads masked)
    return logits_pad[:batch, :vocab_size], loss


# ----- pure-JAX reference for sanity check -------------------------------------
def reference_forward(params, tokens, targets):
    emb = jnp.take(params["emb"], tokens, axis=0).reshape(tokens.shape[0], -1)
    h = jnp.dot(emb, params["w1"], precision=_HI) + params["b1"]
    logits = jnp.dot(h, params["w2"], precision=_HI) + params["b2"]
    logp = jax.nn.log_softmax(logits, axis=-1)
    loss = -jnp.mean(jnp.take_along_axis(logp, targets[:, None], axis=-1))
    return logits, loss


if __name__ == "__main__":
    key = jax.random.PRNGKey(0)
    params = init_params(key)

    k_tok, k_tgt = jax.random.split(jax.random.PRNGKey(1))
    batch = 76                                 # deliberately not a multiple of the tile
    tokens = jax.random.randint(k_tok, (batch, block_size), 0, vocab_size, jnp.int32)
    targets = jax.random.randint(k_tgt, (batch,), 0, vocab_size, jnp.int32)

    # training path: 3-step batch grid (tile=32, padded to 96) exercising pad masking
    logits, loss = final_mlp_forward(params, tokens, targets, batch_tile=32)
    logits = jax.block_until_ready(logits)
    loss = jax.block_until_ready(loss)

    ref_logits, ref_loss = reference_forward(params, tokens, targets)
    assert logits.shape == (batch, vocab_size)
    assert jnp.allclose(logits, ref_logits, atol=5e-3, rtol=5e-3), \
        float(jnp.max(jnp.abs(logits - ref_logits)))
    assert jnp.allclose(loss, ref_loss, atol=5e-3, rtol=5e-3), \
        (float(loss), float(ref_loss))

    # inference path (targets=None -> logits-only kernel, loss is None)
    logits_only, none_loss = final_mlp_forward(params, tokens, None, batch_tile=32)
    logits_only = jax.block_until_ready(logits_only)
    assert none_loss is None
    assert jnp.allclose(logits_only, logits, atol=1e-5)

    print("KERNEL_OK")
</pallas_src>

<mosaic_0001>
module attributes {stable_mosaic.version = 11 : i64} {
  func.func @_train_kernel(%arg0: i32, %arg1: memref<32x10xi32, #tpu.memory_space<vmem>>, %arg2: memref<32x1xi32, #tpu.memory_space<vmem>>, %arg3: memref<10x128x256xbf16, #tpu.memory_space<vmem>>, %arg4: memref<1x256xf32, #tpu.memory_space<vmem>>, %arg5: memref<256x128xbf16, #tpu.memory_space<vmem>>, %arg6: memref<1x128xf32, #tpu.memory_space<vmem>>, %arg7: memref<32x128xf32, #tpu.memory_space<vmem>>, %arg8: memref<32x1xf32, #tpu.memory_space<vmem>>) attributes {dimension_semantics = [#tpu.dimension_semantics<parallel>], iteration_bounds = array<i64: 3>, scalar_prefetch = 0 : i64, scratch_operands = 0 : i64, tpu.core_type = #tpu.core_type<tc>, window_params = [{transform_indices = @transform_0, window_bounds = array<i64: 32, 10>}, {transform_indices = @transform_1, window_bounds = array<i64: 32, 1>}, {pipeline_mode = #tpu.pipeline_mode<synchronous>, transform_indices = @transform_2, window_bounds = array<i64: 10, 128, 256>}, {pipeline_mode = #tpu.pipeline_mode<synchronous>, transform_indices = @transform_3, window_bounds = array<i64: 1, 256>}, {pipeline_mode = #tpu.pipeline_mode<synchronous>, transform_indices = @transform_4, window_bounds = array<i64: 256, 128>}, {pipeline_mode = #tpu.pipeline_mode<synchronous>, transform_indices = @transform_5, window_bounds = array<i64: 1, 128>}, {transform_indices = @transform_6, window_bounds = array<i64: 32, 128>}, {transform_indices = @transform_7, window_bounds = array<i64: 32, 1>}]} {
    %c0 = arith.constant 0 : index
    %c0_0 = arith.constant 0 : index
    %0 = vector.load %arg1[%c0, %c0_0] : memref<32x10xi32, #tpu.memory_space<vmem>>, vector<32x10xi32>
    %1 = tpu.iota {dimensions = array<i32: 1>} : vector<32x128xi32>
    %cst = arith.constant 0.000000e+00 : f32
    %2 = vector.broadcast %cst : f32 to vector<32x256xf32>
    %3 = vector.extract_strided_slice %0 {offsets = [0, 0], sizes = [32, 1], strides = [1, 1]} : vector<32x10xi32> to vector<32x1xi32>
    %4 = vector.broadcast %3 : vector<32x1xi32> to vector<32x128xi32>
    %5 = arith.cmpi eq, %1, %4 : vector<32x128xi32>
    %6 = arith.extui %5 : vector<32x128xi1> to vector<32x128xi32>
    %7 = arith.sitofp %6 : vector<32x128xi32> to vector<32x128xf32>
    %8 = arith.truncf %7 : vector<32x128xf32> to vector<32x128xbf16>
    %c0_1 = arith.constant 0 : index
    %c0_2 = arith.constant 0 : index
    %c0_3 = arith.constant 0 : index
    %9 = vector.load %arg3[%c0_1, %c0_2, %c0_3] : memref<10x128x256xbf16, #tpu.memory_space<vmem>>, vector<1x128x256xbf16>
    %10 = vector.shape_cast %9 : vector<1x128x256xbf16> to vector<128x256xbf16>
    %cst_4 = arith.constant dense<0.000000e+00> : vector<32x256xf32>
    %11 = tpu.matmul %8, %10, %cst_4 {dimension_numbers = #tpu.dot_dimension_numbers<[1], [0], [0], [1], [0, 0, 1, 1], [], []>} : vector<32x128xbf16>, vector<128x256xbf16>, vector<32x256xf32> -> vector<32x256xf32>
    %12 = arith.addf %2, %11 : vector<32x256xf32>
    %13 = vector.extract_strided_slice %0 {offsets = [0, 1], sizes = [32, 1], strides = [1, 1]} : vector<32x10xi32> to vector<32x1xi32>
    %14 = vector.broadcast %13 : vector<32x1xi32> to vector<32x128xi32>
    %15 = arith.cmpi eq, %1, %14 : vector<32x128xi32>
    %16 = arith.extui %15 : vector<32x128xi1> to vector<32x128xi32>
    %17 = arith.sitofp %16 : vector<32x128xi32> to vector<32x128xf32>
    %18 = arith.truncf %17 : vector<32x128xf32> to vector<32x128xbf16>
    %c1 = arith.constant 1 : index
    %c0_5 = arith.constant 0 : index
    %c0_6 = arith.constant 0 : index
    %19 = vector.load %arg3[%c1, %c0_5, %c0_6] : memref<10x128x256xbf16, #tpu.memory_space<vmem>>, vector<1x128x256xbf16>
    %20 = vector.shape_cast %19 : vector<1x128x256xbf16> to vector<128x256xbf16>
    %cst_7 = arith.constant dense<0.000000e+00> : vector<32x256xf32>
    %21 = tpu.matmul %18, %20, %cst_7 {dimension_numbers = #tpu.dot_dimension_numbers<[1], [0], [0], [1], [0, 0, 1, 1], [], []>} : vector<32x128xbf16>, vector<128x256xbf16>, vector<32x256xf32> -> vector<32x256xf32>
    %22 = arith.addf %12, %21 : vector<32x256xf32>
    %23 = vector.extract_strided_slice %0 {offsets = [0, 2], sizes = [32, 1], strides = [1, 1]} : vector<32x10xi32> to vector<32x1xi32>
    %24 = vector.broadcast %23 : vector<32x1xi32> to vector<32x128xi32>
    %25 = arith.cmpi eq, %1, %24 : vector<32x128xi32>
    %26 = arith.extui %25 : vector<32x128xi1> to vector<32x128xi32>
    %27 = arith.sitofp %26 : vector<32x128xi32> to vector<32x128xf32>
    %28 = arith.truncf %27 : vector<32x128xf32> to vector<32x128xbf16>
    %c2 = arith.constant 2 : index
    %c0_8 = arith.constant 0 : index
    %c0_9 = arith.constant 0 : index
    %29 = vector.load %arg3[%c2, %c0_8, %c0_9] : memref<10x128x256xbf16, #tpu.memory_space<vmem>>, vector<1x128x256xbf16>
    %30 = vector.shape_cast %29 : vector<1x128x256xbf16> to vector<128x256xbf16>
    %cst_10 = arith.constant dense<0.000000e+00> : vector<32x256xf32>
    %31 = tpu.matmul %28, %30, %cst_10 {dimension_numbers = #tpu.dot_dimension_numbers<[1], [0], [0], [1], [0, 0, 1, 1], [], []>} : vector<32x128xbf16>, vector<128x256xbf16>, vector<32x256xf32> -> vector<32x256xf32>
    %32 = arith.addf %22, %31 : vector<32x256xf32>
    %33 = vector.extract_strided_slice %0 {offsets = [0, 3], sizes = [32, 1], strides = [1, 1]} : vector<32x10xi32> to vector<32x1xi32>
    %34 = vector.broadcast %33 : vector<32x1xi32> to vector<32x128xi32>
    %35 = arith.cmpi eq, %1, %34 : vector<32x128xi32>
    %36 = arith.extui %35 : vector<32x128xi1> to vector<32x128xi32>
    %37 = arith.sitofp %36 : vector<32x128xi32> to vector<32x128xf32>
    %38 = arith.truncf %37 : vector<32x128xf32> to vector<32x128xbf16>
    %c3 = arith.constant 3 : index
    %c0_11 = arith.constant 0 : index
    %c0_12 = arith.constant 0 : index
    %39 = vector.load %arg3[%c3, %c0_11, %c0_12] : memref<10x128x256xbf16, #tpu.memory_space<vmem>>, vector<1x128x256xbf16>
    %40 = vector.shape_cast %39 : vector<1x128x256xbf16> to vector<128x256xbf16>
    %cst_13 = arith.constant dense<0.000000e+00> : vector<32x256xf32>
    %41 = tpu.matmul %38, %40, %cst_13 {dimension_numbers = #tpu.dot_dimension_numbers<[1], [0], [0], [1], [0, 0, 1, 1], [], []>} : vector<32x128xbf16>, vector<128x256xbf16>, vector<32x256xf32> -> vector<32x256xf32>
    %42 = arith.addf %32, %41 : vector<32x256xf32>
    %43 = vector.extract_strided_slice %0 {offsets = [0, 4], sizes = [32, 1], strides = [1, 1]} : vector<32x10xi32> to vector<32x1xi32>
    %44 = vector.broadcast %43 : vector<32x1xi32> to vector<32x128xi32>
    %45 = arith.cmpi eq, %1, %44 : vector<32x128xi32>
    %46 = arith.extui %45 : vector<32x128xi1> to vector<32x128xi32>
    %47 = arith.sitofp %46 : vector<32x128xi32> to vector<32x128xf32>
    %48 = arith.truncf %47 : vector<32x128xf32> to vector<32x128xbf16>
    %c4 = arith.constant 4 : index
    %c0_14 = arith.constant 0 : index
    %c0_15 = arith.constant 0 : index
    %49 = vector.load %arg3[%c4, %c0_14, %c0_15] : memref<10x128x256xbf16, #tpu.memory_space<vmem>>, vector<1x128x256xbf16>
    %50 = vector.shape_cast %49 : vector<1x128x256xbf16> to vector<128x256xbf16>
    %cst_16 = arith.constant dense<0.000000e+00> : vector<32x256xf32>
    %51 = tpu.matmul %48, %50, %cst_16 {dimension_numbers = #tpu.dot_dimension_numbers<[1], [0], [0], [1], [0, 0, 1, 1], [], []>} : vector<32x128xbf16>, vector<128x256xbf16>, vector<32x256xf32> -> vector<32x256xf32>
    %52 = arith.addf %42, %51 : vector<32x256xf32>
    %53 = vector.extract_strided_slice %0 {offsets = [0, 5], sizes = [32, 1], strides = [1, 1]} : vector<32x10xi32> to vector<32x1xi32>
    %54 = vector.broadcast %53 : vector<32x1xi32> to vector<32x128xi32>
    %55 = arith.cmpi eq, %1, %54 : vector<32x128xi32>
    %56 = arith.extui %55 : vector<32x128xi1> to vector<32x128xi32>
    %57 = arith.sitofp %56 : vector<32x128xi32> to vector<32x128xf32>
    %58 = arith.truncf %57 : vector<32x128xf32> to vector<32x128xbf16>
    %c5 = arith.constant 5 : index
    %c0_17 = arith.constant 0 : index
    %c0_18 = arith.constant 0 : index
    %59 = vector.load %arg3[%c5, %c0_17, %c0_18] : memref<10x128x256xbf16, #tpu.memory_space<vmem>>, vector<1x128x256xbf16>
    %60 = vector.shape_cast %59 : vector<1x128x256xbf16> to vector<128x256xbf16>
    %cst_19 = arith.constant dense<0.000000e+00> : vector<32x256xf32>
    %61 = tpu.matmul %58, %60, %cst_19 {dimension_numbers = #tpu.dot_dimension_numbers<[1], [0], [0], [1], [0, 0, 1, 1], [], []>} : vector<32x128xbf16>, vector<128x256xbf16>, vector<32x256xf32> -> vector<32x256xf32>
    %62 = arith.addf %52, %61 : vector<32x256xf32>
    %63 = vector.extract_strided_slice %0 {offsets = [0, 6], sizes = [32, 1], strides = [1, 1]} : vector<32x10xi32> to vector<32x1xi32>
    %64 = vector.broadcast %63 : vector<32x1xi32> to vector<32x128xi32>
    %65 = arith.cmpi eq, %1, %64 : vector<32x128xi32>
    %66 = arith.extui %65 : vector<32x128xi1> to vector<32x128xi32>
    %67 = arith.sitofp %66 : vector<32x128xi32> to vector<32x128xf32>
    %68 = arith.truncf %67 : vector<32x128xf32> to vector<32x128xbf16>
    %c6 = arith.constant 6 : index
    %c0_20 = arith.constant 0 : index
    %c0_21 = arith.constant 0 : index
    %69 = vector.load %arg3[%c6, %c0_20, %c0_21] : memref<10x128x256xbf16, #tpu.memory_space<vmem>>, vector<1x128x256xbf16>
    %70 = vector.shape_cast %69 : vector<1x128x256xbf16> to vector<128x256xbf16>
    %cst_22 = arith.constant dense<0.000000e+00> : vector<32x256xf32>
    %71 = tpu.matmul %68, %70, %cst_22 {dimension_numbers = #tpu.dot_dimension_numbers<[1], [0], [0], [1], [0, 0, 1, 1], [], []>} : vector<32x128xbf16>, vector<128x256xbf16>, vector<32x256xf32> -> vector<32x256xf32>
    %72 = arith.addf %62, %71 : vector<32x256xf32>
    %73 = vector.extract_strided_slice %0 {offsets = [0, 7], sizes = [32, 1], strides = [1, 1]} : vector<32x10xi32> to vector<32x1xi32>
    %74 = vector.broadcast %73 : vector<32x1xi32> to vector<32x128xi32>
    %75 = arith.cmpi eq, %1, %74 : vector<32x128xi32>
    %76 = arith.extui %75 : vector<32x128xi1> to vector<32x128xi32>
    %77 = arith.sitofp %76 : vector<32x128xi32> to vector<32x128xf32>
    %78 = arith.truncf %77 : vector<32x128xf32> to vector<32x128xbf16>
    %c7 = arith.constant 7 : index
    %c0_23 = arith.constant 0 : index
    %c0_24 = arith.constant 0 : index
    %79 = vector.load %arg3[%c7, %c0_23, %c0_24] : memref<10x128x256xbf16, #tpu.memory_space<vmem>>, vector<1x128x256xbf16>
    %80 = vector.shape_cast %79 : vector<1x128x256xbf16> to vector<128x256xbf16>
    %cst_25 = arith.constant dense<0.000000e+00> : vector<32x256xf32>
    %81 = tpu.matmul %78, %80, %cst_25 {dimension_numbers = #tpu.dot_dimension_numbers<[1], [0], [0], [1], [0, 0, 1, 1], [], []>} : vector<32x128xbf16>, vector<128x256xbf16>, vector<32x256xf32> -> vector<32x256xf32>
    %82 = arith.addf %72, %81 : vector<32x256xf32>
    %83 = vector.extract_strided_slice %0 {offsets = [0, 8], sizes = [32, 1], strides = [1, 1]} : vector<32x10xi32> to vector<32x1xi32>
    %84 = vector.broadcast %83 : vector<32x1xi32> to vector<32x128xi32>
    %85 = arith.cmpi eq, %1, %84 : vector<32x128xi32>
    %86 = arith.extui %85 : vector<32x128xi1> to vector<32x128xi32>
    %87 = arith.sitofp %86 : vector<32x128xi32> to vector<32x128xf32>
    %88 = arith.truncf %87 : vector<32x128xf32> to vector<32x128xbf16>
    %c8 = arith.constant 8 : index
    %c0_26 = arith.constant 0 : index
    %c0_27 = arith.constant 0 : index
    %89 = vector.load %arg3[%c8, %c0_26, %c0_27] : memref<10x128x256xbf16, #tpu.memory_space<vmem>>, vector<1x128x256xbf16>
    %90 = vector.shape_cast %89 : vector<1x128x256xbf16> to vector<128x256xbf16>
    %cst_28 = arith.constant dense<0.000000e+00> : vector<32x256xf32>
    %91 = tpu.matmul %88, %90, %cst_28 {dimension_numbers = #tpu.dot_dimension_numbers<[1], [0], [0], [1], [0, 0, 1, 1], [], []>} : vector<32x128xbf16>, vector<128x256xbf16>, vector<32x256xf32> -> vector<32x256xf32>
    %92 = arith.addf %82, %91 : vector<32x256xf32>
    %93 = vector.extract_strided_slice %0 {offsets = [0, 9], sizes = [32, 1], strides = [1, 1]} : vector<32x10xi32> to vector<32x1xi32>
    %94 = vector.broadcast %93 : vector<32x1xi32> to vector<32x128xi32>
    %95 = arith.cmpi eq, %1, %94 : vector<32x128xi32>
    %96 = arith.extui %95 : vector<32x128xi1> to vector<32x128xi32>
    %97 = arith.sitofp %96 : vector<32x128xi32> to vector<32x128xf32>
    %98 = arith.truncf %97 : vector<32x128xf32> to vector<32x128xbf16>
    %c9 = arith.constant 9 : index
    %c0_29 = arith.constant 0 : index
    %c0_30 = arith.constant 0 : index
    %99 = vector.load %arg3[%c9, %c0_29, %c0_30] : memref<10x128x256xbf16, #tpu.memory_space<vmem>>, vector<1x128x256xbf16>
    %100 = vector.shape_cast %99 : vector<1x128x256xbf16> to vector<128x256xbf16>
    %cst_31 = arith.constant dense<0.000000e+00> : vector<32x256xf32>
    %101 = tpu.matmul %98, %100, %cst_31 {dimension_numbers = #tpu.dot_dimension_numbers<[1], [0], [0], [1], [0, 0, 1, 1], [], []>} : vector<32x128xbf16>, vector<128x256xbf16>, vector<32x256xf32> -> vector<32x256xf32>
    %102 = arith.addf %92, %101 : vector<32x256xf32>
    %c0_32 = arith.constant 0 : index
    %c0_33 = arith.constant 0 : index
    %103 = vector.load %arg4[%c0_32, %c0_33] : memref<1x256xf32, #tpu.memory_space<vmem>>, vector<1x256xf32>
    %104 = vector.broadcast %103 : vector<1x256xf32> to vector<32x256xf32>
    %105 = arith.addf %102, %104 : vector<32x256xf32>
    %106 = arith.truncf %105 : vector<32x256xf32> to vector<32x256xbf16>
    %c0_34 = arith.constant 0 : index
    %c0_35 = arith.constant 0 : index
    %107 = vector.load %arg5[%c0_34, %c0_35] : memref<256x128xbf16, #tpu.memory_space<vmem>>, vector<256x128xbf16>
    %cst_36 = arith.constant dense<0.000000e+00> : vector<32x128xf32>
    %108 = tpu.matmul %106, %107, %cst_36 {dimension_numbers = #tpu.dot_dimension_numbers<[1], [0], [0], [1], [0, 0, 1, 1], [], []>} : vector<32x256xbf16>, vector<256x128xbf16>, vector<32x128xf32> -> vector<32x128xf32>
    %c0_37 = arith.constant 0 : index
    %c0_38 = arith.constant 0 : index
    %109 = vector.load %arg6[%c0_37, %c0_38] : memref<1x128xf32, #tpu.memory_space<vmem>>, vector<1x128xf32>
    %110 = vector.broadcast %109 : vector<1x128xf32> to vector<32x128xf32>
    %111 = arith.addf %108, %110 : vector<32x128xf32>
    %c0_39 = arith.constant 0 : index
    %c0_40 = arith.constant 0 : index
    %112 = vector.load %arg7[%c0_39, %c0_40] : memref<32x128xf32, #tpu.memory_space<vmem>>, vector<32x128xf32>
    tpu.vector_store %arg7[%c0_39, %c0_40], %111 {strides = array<i32>} : memref<32x128xf32, #tpu.memory_space<vmem>>, vector<32x128xf32>,
    %113 = tpu.iota {dimensions = array<i32: 1>} : vector<32x128xi32>
    %c0_41 = arith.constant 0 : index
    %c0_42 = arith.constant 0 : index
    %114 = vector.load %arg2[%c0_41, %c0_42] : memref<32x1xi32, #tpu.memory_space<vmem>>, vector<32x1xi32>
    %c30_i32 = arith.constant 30 : i32
    %115 = vector.broadcast %c30_i32 : i32 to vector<32x128xi32>
    %116 = arith.cmpi slt, %113, %115 : vector<32x128xi32>
    %cst_43 = arith.constant -1.000000e+30 : f32
    %117 = vector.broadcast %cst_43 : f32 to vector<32x128xf32>
    %118 = arith.select %116, %111, %117 : vector<32x128xi1>, vector<32x128xf32>
    %cst_44 = arith.constant dense<0xFF800000> : vector<32xf32>
    %119 = vector.multi_reduction <maximumf>, %118, %cst_44 [1] : vector<32x128xf32> to vector<32xf32>
    %120 = vector.shape_cast %119 : vector<32xf32> to vector<32x1xf32>
    %121 = vector.broadcast %120 : vector<32x1xf32> to vector<32x128xf32>
    %122 = arith.subf %118, %121 : vector<32x128xf32>
    %123 = math.exp %122 : vector<32x128xf32>
    %cst_45 = arith.constant dense<0.000000e+00> : vector<32xf32>
    %124 = vector.multi_reduction <add>, %123, %cst_45 [1] : vector<32x128xf32> to vector<32xf32>
    %125 = vector.shape_cast %124 : vector<32xf32> to vector<32x1xf32>
    %126 = math.log %125 : vector<32x1xf32>
    %127 = arith.addf %120, %126 : vector<32x1xf32>
    %128 = vector.broadcast %114 : vector<32x1xi32> to vector<32x128xi32>
    %129 = arith.cmpi eq, %113, %128 : vector<32x128xi32>
    %cst_46 = arith.constant 0.000000e+00 : f32
    %130 = vector.broadcast %cst_46 : f32 to vector<32x128xf32>
    %131 = arith.select %129, %111, %130 : vector<32x128xi1>, vector<32x128xf32>
    %cst_47 = arith.constant dense<0.000000e+00> : vector<32xf32>
    %132 = vector.multi_reduction <add>, %131, %cst_47 [1] : vector<32x128xf32> to vector<32xf32>
    %133 = vector.shape_cast %132 : vector<32xf32> to vector<32x1xf32>
    %c0_i32 = arith.constant 0 : i32
    %134 = vector.broadcast %c0_i32 : i32 to vector<32x1xi32>
    %135 = arith.cmpi sge, %114, %134 : vector<32x1xi32>
    %136 = arith.extui %135 : vector<32x1xi1> to vector<32x1xi32>
    %137 = arith.sitofp %136 : vector<32x1xi32> to vector<32x1xf32>
    %138 = arith.subf %127, %133 : vector<32x1xf32>
    %139 = arith.mulf %138, %137 : vector<32x1xf32>
    %c0_48 = arith.constant 0 : index
    %c0_49 = arith.constant 0 : index
    %140 = vector.load %arg8[%c0_48, %c0_49] : memref<32x1xf32, #tpu.memory_space<vmem>>, vector<32x1xf32>
    tpu.vector_store %arg8[%c0_48, %c0_49], %139 {strides = array<i32>} : memref<32x1xf32, #tpu.memory_space<vmem>>, vector<32x1xf32>,
    return
  }
  func.func @transform_0(%arg0: i32) -> (i32, i32) {
    %c0_i32 = arith.constant 0 : i32
    %c0_i32_0 = arith.constant 0 : i32
    return %arg0, %c0_i32 : i32, i32
  }
  func.func @transform_1(%arg0: i32) -> (i32, i32) {
    %c0_i32 = arith.constant 0 : i32
    %c0_i32_0 = arith.constant 0 : i32
    return %arg0, %c0_i32 : i32, i32
  }
  func.func @transform_2(%arg0: i32) -> (i32, i32, i32) {
    %c0_i32 = arith.constant 0 : i32
    %c0_i32_0 = arith.constant 0 : i32
    %c0_i32_1 = arith.constant 0 : i32
    %c0_i32_2 = arith.constant 0 : i32
    return %c0_i32, %c0_i32_0, %c0_i32_1 : i32, i32, i32
  }
  func.func @transform_3(%arg0: i32) -> (i32, i32) {
    %c0_i32 = arith.constant 0 : i32
    %c0_i32_0 = arith.constant 0 : i32
    %c0_i32_1 = arith.constant 0 : i32
    return %c0_i32, %c0_i32_0 : i32, i32
  }
  func.func @transform_4(%arg0: i32) -> (i32, i32) {
    %c0_i32 = arith.constant 0 : i32
    %c0_i32_0 = arith.constant 0 : i32
    %c0_i32_1 = arith.constant 0 : i32
    return %c0_i32, %c0_i32_0 : i32, i32
  }
  func.func @transform_5(%arg0: i32) -> (i32, i32) {
    %c0_i32 = arith.constant 0 : i32
    %c0_i32_0 = arith.constant 0 : i32
    %c0_i32_1 = arith.constant 0 : i32
    return %c0_i32, %c0_i32_0 : i32, i32
  }
  func.func @transform_6(%arg0: i32) -> (i32, i32) {
    %c0_i32 = arith.constant 0 : i32
    %c0_i32_0 = arith.constant 0 : i32
    return %arg0, %c0_i32 : i32, i32
  }
  func.func @transform_7(%arg0: i32) -> (i32, i32) {
    %c0_i32 = arith.constant 0 : i32
    %c0_i32_0 = arith.constant 0 : i32
    return %arg0, %c0_i32 : i32, i32
  }
}

</mosaic_0001>

<bundles_post_ra>
// kernel: tpu_custom_call.1
= control target key start
LH: loop header
LB: loop body
LE: loop exit
PB: predicated region body
PF: predicated region fallthrough
CT: control target
= control target key end

     0   :  { %13 = vsyncpa [#allocation3], 0  ;;  %s3980_s0 = inlined_call_operand.vmem [shape: s32[96,10], index: 0, kind: input, shape index: {}]   ;;  %s3981_s1 = inlined_call_operand.vmem [shape: s32[96,1], index: 1, kind: input, shape index: {}]   ;;  %s3982_s2 = inlined_call_operand.hbm [shape: bf16[10,128,256], index: 2, kind: input, shape index: {}]   ;;  %s3983_s3 = inlined_call_operand.vmem [shape: f32[1,256], index: 3, kind: input, shape index: {}]   ;;  %s3984_s4 = inlined_call_operand.vmem [shape: bf16[256,128], index: 4, kind: input, shape index: {}]   ;;  %s3985_s5 = inlined_call_operand.vmem [shape: f32[1,128], index: 5, kind: input, shape index: {}]   ;;  %s3986_s6 = inlined_call_operand.hbm [shape: f32[96,128], index: 6, kind: output, shape index: {0}]   ;;  %s3987_s7 = inlined_call_operand.vmem [shape: f32[96,1], index: 7, kind: output, shape index: {1}]  }
   0x1   :  { %14 = vsyncpa [#allocation4], 0 }
   0x2   :  { %16 = vsyncpa [#allocation4 + $0x1], 0  ;;  %s3511_s24 = smov 0   ;;  %s3513_s25 = smov 0  }
   0x3   :  { %s3515_s26 = smov 0   ;;  %s3517_s27 = smov 0  }
   0x4 LB: > { %s3532_s28 = sadd.s32 4294967295, %s3451_s27   ;;  %s2609_s29 = sadd.s32 4294967294, %s3451_s27   ;;  %s3451_s27 = sphi %s3517_s27, %s4003_s27   ;;  %s3447_s26 = sphi %s3515_s26, %s4002_s26   ;;  %s3443_s25 = sphi %s3513_s25, %s4001_s25   ;;  %s3439_s24 = sphi %s3511_s24, %s4000_s24  }
   0x5   : > { %s3536_s30 = sadd.s32 1, %s3451_s27   ;;  %s165_s8 = sadd.s32 1, %s3447_s26 }
   0x6   : > { %s162_s9 = ssub.s32 %s3451_s27, %s3536_s30  ;;  %p175_p0 = scmp.ne.s32.totalorder %s3447_s26, %s3443_s25 }
   0x7   : > { %p163_p1 = scmp.eq.s32.totalorder %s162_s9, 0  ;;  %p176_p2 = scmp.eq.s32.totalorder %s3532_s28, 2 }
   0x8   : > { %p181_p3 = scmp.ne.s32.totalorder %s3443_s25, %s3439_s24  ;;  %p182_p4 = scmp.eq.s32.totalorder %s2609_s29, 2 }
   0x9   : > { %s3547_s10 = scalar_select %p163_p1, %s3447_s26, %s165_s8  }
   0xa   : > { %p3549_p5 = por %p176_p2, %p175_p0  ;;  %p3553_p6 = por %p182_p4, %p181_p3 }
   0xb   : > { %p2610_p7 = scmp.ge.s32.totalorder %s3451_s27, 1  ;;  %p215_p8 = scmp.lt.s32.totalorder %s3451_s27, 4 }
   0xc   : > { %s3991_s11 = scalar_select %p3549_p5, 1, 0 }
   0xd   : > { %s3992_s12 = scalar_select %p3553_p6, 1, 0 }
   0xe   : > { %p3988_p9 = scmp.eq.s32.totalorder %s3532_s28, 0  ;;  %p3560_p10 = pnand %p2610_p7, %p215_p8 }
   0xf   : > { %s3453_s14 = smov [#allocation2]   ;;  %s3357_s19 = scalar_lea.hbm %s3982_s2, 20480 }
  0x10   : > { %s3993_s13 = scalar_select %p3560_p10, 1, 0 }
  0x11   : > { %s227_s15 = sshll.u32 %s3453_s14, 4  ;;  %p2995_p11 = pneg %p3560_p10  ;;  %s228_s15 = int_to_ptr.vmem [resolvable:$true] %s227_s15 }
  0x12   : > { %p3358_p13 = scmp.ne.s32.totalorder %s3982_s2, %s3357_s19  ;;  %p3364_p3 = scmp.lt.u32.totalorder %s3357_s19, %s3982_s2 }
  0x13   : > { %p3568_p12 = pnand %p3988_p9, %p2995_p11 }
  0x15   : > { %p3359_p0 = pneg %p3568_p12 }
  0x17   : > { %p3360_p1 = pnand %p3359_p0, %p3358_p13 }
  0x19   : > { %p3361_p2 = pneg %p3360_p1 }
  0x1b   : > { %p3366_p4 = pnand %p3364_p3, %p3361_p2 }
  0x1d   : > { %3369 = shalt.err (!%p3366_p4)
}
  0x1e   : > { %s3370_s29 = scalar_lea.vmem %s228_s15, 20480  ;;  %p3378_p9 = scmp.lt.s32.totalorder %s228_s15, %s228_s15 }
  0x1f   : > { %p3371_p7 = scmp.ne.s32.totalorder %s228_s15, %s3370_s29  ;;  %p3379_p6 = scmp.lt.s32.totalorder %s3370_s29, %s3370_s29 }
  0x21   : > { %p3373_p8 = pnand %p3371_p7, %p3359_p0  ;;  %p3380_p5 = por %p3379_p6, %p3378_p9 }
  0x23   : > { %p3374_p11 = pneg %p3373_p8 }
  0x25   : > { %p3381_p10 = pnand %p3380_p5, %p3374_p11 }
  0x27   : > { %3384 = shalt.err (!%p3381_p10)
}
  0x28   : > { %s3454_s8 = smov 128   ;;  %s3455_s9 = smov 8  }
  0x29   : > { %2998 = dma.hbm_to_vmem [thread:$0]  (!%p3568_p12), %s3982_s2, 20480, %s228_s15, [#allocation3], %s3454_s8, %s3454_s8, %s3455_s9  }
  0x2a   : > { %p3995_p13 = scmp.ne.s32.totalorder %s3993_s13, 0 }
  0x2b   : > { %p3996_p1 = scmp.eq.s32.totalorder (!%p3995_p13), %s3532_s28, 0 }
  0x2c   : > { %270 = sbr.rel (%p3995_p13) target bundleno = 1169 (0x491), region = 44 }
  0x33   : > { %3430 = dma.done.wait (%p3996_p1), [#allocation3], 20480   ;;  %p3997_p0 = pmov %p3996_p1 }
  0x34   : > { %s2616_s18 = sshll.u32 %s3532_s28, 2  ;;  %v3456_v0 = vmov 4   ;;  %v3457_v1 = vmov 0   ;;  %v3085_v6 = vld [vmem:[#allocation2 + $0x204] ss:$8 sps:$4 sm:$0xff]   ;;  %v3458_v13 = vmov 5   ;;  %v336_v48 = vlaneseq }
  0x35   : > { %3432 = vsyncadd (%p3997_p0), [#allocation3], 4294946816  ;;  %3056 = vset.pattern.permute.xlu1 %v3456_v0  ;;  %3055 = vset.pattern.permute.xlu0 %v3456_v0  ;;  %p313_p5 = scmp.lt.s32.totalorder %s2616_s18, 11  ;;  %v3087_v7 = vld [vmem:[#allocation2 + $0x200] ss:$8 sps:$4 sm:$0xff]   ;;  %v3459_v23 = vmov 1  }
  0x36   : > { %1212 = vmatprep.mubr.bf16.mxu0 %v3457_v1  ;;  %535 = vmatprep.mubr.bf16.mxu1 %v3457_v1  ;;  %v3088_v8 = vld [vmem:[#allocation2 + $0x214] ss:$8 sps:$4 sm:$0xff]   ;;  %v3090_v9 = vld [vmem:[#allocation2 + $0x210] ss:$8 sps:$4 sm:$0xff]   ;;  %v3091_v10 = vld [vmem:[#allocation2 + $0x224] ss:$8 sps:$4 sm:$0xff]  }
  0x37   : > { %s4005_s18 = smov (!%p313_p5, %s2616_s18), 11  ;;  %1180 = vmatprep.subr.bf16.mxu0 %v3085_v6  ;;  %v3097_v11 = vld [vmem:[#allocation2 + $0x84] ss:$8 sps:$4 sm:$0xff]   ;;  %v3099_v12 = vld [vmem:[#allocation2 + $0x80] ss:$8 sps:$4 sm:$0xff]   ;;  %v3460_v28 = vmov 6  }
  0x38   : > { %s3597_s13 = sshll.u32 %s4005_s18, 3  ;;  %1181 = vmatpush1.bf16.msra.mxu0 %v3087_v7  ;;  %v3103_v14 = vld [vmem:[#allocation2 + $0x94] ss:$8 sps:$4 sm:$0xff]   ;;  %v3093_v15 = vld [vmem:[#allocation2 + $0x220] ss:$8 sps:$4 sm:$0xff]   ;;  %503 = vmatprep.subr.bf16.mxu1 %v3097_v11  ;;  %v3461_v43 = vmov 7  }
  0x39   : > { %s316_s19 = scalar_lea.vmem %s3980_s0, %s3597_s13  ;;  %1182 = vmatprep.subr.bf16.mxu0 %v3088_v8  ;;  %v3094_v16 = vld [vmem:[#allocation2 + $0x234] ss:$8 sps:$4 sm:$0xff]   ;;  %504 = vmatpush1.bf16.msra.mxu1 %v3099_v12  ;;  %v3105_v17 = vld [vmem:[#allocation2 + $0x90] ss:$8 sps:$4 sm:$0xff]   ;;  %v3109_v18 = vld [vmem:[#allocation2 + $0xa4] ss:$8 sps:$4 sm:$0xff]   ;;  %s322_s22 = scalar_lea.vmem %s3981_s1, %s3597_s13 }
  0x3a   : > { %v3603_v2 = vld [vmem:[%s316_s19 + $0x10] sm:$0xff]  ;;  %v3605_v3 = vld [vmem:[%s316_s19] sm:$0xff]  ;;  %v3607_v4 = vld [vmem:[%s316_s19 + $0x18] sm:$0xff]  ;;  %505 = vmatprep.subr.bf16.mxu1 %v3103_v14  ;;  %v3462_v44 = vmov 2   ;;  %v3463_v45 = vmov 8   ;;  %v3464_v46 = vmov 3  }
  0x3b   : > { %1064 = vperm.xlu1 %3056, %v3603_v2   ;;  %1058 = vperm.xlu0 %3055, %v3605_v3   ;;  %v3611_v5 = vld [vmem:[%s316_s19 + $0x8] sm:$0xff]  ;;  %v3096_v19 = vld [vmem:[#allocation2 + $0x230] ss:$8 sps:$4 sm:$0xff]   ;;  %v3115_v22 = vld [vmem:[#allocation2 + $0xb4] ss:$8 sps:$4 sm:$0xff]   ;;  %v3465_v47 = vmov 9  }
  0x3c   : > { %1183 = vmatpush1.bf16.msra.mxu0 %v3090_v9  ;;  %v3100_v20 = vld [vmem:[#allocation2 + $0x244] ss:$8 sps:$4 sm:$0xff]   ;;  %v3111_v21 = vld [vmem:[#allocation2 + $0xa0] ss:$8 sps:$4 sm:$0xff]   ;;  %v3106_v25 = vld [vmem:[#allocation2 + $0x254] ss:$8 sps:$4 sm:$0xff]  }
  0x3d   : > { %1184 = vmatprep.subr.bf16.mxu0 %v3091_v10  ;;  %506 = vmatpush1.bf16.msra.mxu1 %v3105_v17  ;;  %v3102_v24 = vld [vmem:[#allocation2 + $0x240] ss:$8 sps:$4 sm:$0xff]   ;;  %v3117_v26 = vld [vmem:[#allocation2 + $0xb0] ss:$8 sps:$4 sm:$0xff]   ;;  %v3121_v27 = vld [vmem:[#allocation2 + $0xc4] ss:$8 sps:$4 sm:$0xff]  }
  0x3e   : > { %507 = vmatprep.subr.bf16.mxu1 %v3109_v18  ;;  %v3108_v29 = vld [vmem:[#allocation2 + $0x250] ss:$8 sps:$4 sm:$0xff]   ;;  %v3123_v30 = vld [vmem:[#allocation2 + $0xc0] ss:$8 sps:$4 sm:$0xff]   ;;  %v3112_v31 = vld [vmem:[#allocation2 + $0x264] ss:$8 sps:$4 sm:$0xff]  }
  0x3f   : > { %1067 = vperm.xlu1 %3056, %v3607_v4   ;;  %1061 = vperm.xlu0 %3055, %v3611_v5   ;;  %v3127_v32 = vld [vmem:[#allocation2 + $0xd4] ss:$8 sps:$4 sm:$0xff]   ;;  %v3114_v33 = vld [vmem:[#allocation2 + $0x260] ss:$8 sps:$4 sm:$0xff]   ;;  %v3129_v34 = vld [vmem:[#allocation2 + $0xd0] ss:$8 sps:$4 sm:$0xff]  }
  0x40   : > { %1185 = vmatpush1.bf16.msra.mxu0 %v3093_v15  ;;  %v3118_v35 = vld [vmem:[#allocation2 + $0x274] ss:$8 sps:$4 sm:$0xff]   ;;  %v3133_v36 = vld [vmem:[#allocation2 + $0xe4] ss:$8 sps:$4 sm:$0xff]   ;;  %v3120_v37 = vld [vmem:[#allocation2 + $0x270] ss:$8 sps:$4 sm:$0xff]  }
  0x41   : > { %1186 = vmatprep.subr.bf16.mxu0 %v3094_v16  ;;  %508 = vmatpush1.bf16.msra.mxu1 %v3111_v21  ;;  %v3126_v38 = vld [vmem:[#allocation2 + $0x284] ss:$8 sps:$4 sm:$0xff]   ;;  %v3135_v39 = vld [vmem:[#allocation2 + $0xe0] ss:$8 sps:$4 sm:$0xff]   ;;  %v3139_v40 = vld [vmem:[#allocation2 + $0xf4] ss:$8 sps:$4 sm:$0xff]  }
  0x42   : > { %509 = vmatprep.subr.bf16.mxu1 %v3115_v22  ;;  %v3141_v41 = vld [vmem:[#allocation2 + $0xf0] ss:$8 sps:$4 sm:$0xff]   ;;  %v3147_v42 = vld [vmem:[#allocation2 + $0x4] ss:$8 sps:$4 sm:$0xff]   ;;  %v3657_v51 = vand.u32 127, %v336_v48  ;;  %s302_s17 = sand.u32 1, %s3443_s25  }
  0x43   : > { %3058 = vset.pattern.permute.xlu1 %v3458_v13  ;;  %3057 = vset.pattern.permute.xlu0 %v3458_v13  ;;  %v3124_v53 = vld [vmem:[#allocation2 + $0x280] ss:$8 sps:$4 sm:$0xff]   ;;  %v3132_v55 = vld [vmem:[#allocation2 + $0x294] ss:$8 sps:$4 sm:$0xff]   ;;  %v3466_v56 = vmov 1.0|1.0  }
  0x44   : > { %1245 = vperm.xlu1 %3058, %v3611_v5   ;;  %1242 = vperm.xlu0 %3057, %v3605_v3   ;;  %v3130_v57 = vld [vmem:[#allocation2 + $0x290] ss:$8 sps:$4 sm:$0xff]   ;;  %v3138_v60 = vld [vmem:[#allocation2 + $0x2a4] ss:$8 sps:$4 sm:$0xff]   ;;  %v3136_v61 = vld [vmem:[#allocation2 + $0x2a0] ss:$8 sps:$4 sm:$0xff]  }
  0x45   : > { %1187 = vmatpush1.bf16.msra.mxu0 %v3096_v19  ;;  %510 = vmatpush1.bf16.msra.mxu1 %v3117_v26  ;;  %v3144_v0 = vld [vmem:[#allocation2 + $0x2b4] ss:$8 sps:$4 sm:$0xff]   ;;  %v3145_v6 = vld [vmem:[#allocation2] ss:$8 sps:$4 sm:$0xff]   ;;  %v3151_v10 = vld [vmem:[#allocation2 + $0x10] ss:$8 sps:$4 sm:$0xff]  }
  0x46   : > { %1188 = vmatprep.subr.bf16.mxu0 %v3100_v20  ;;  %511 = vmatprep.subr.bf16.mxu1 %v3121_v27  ;;  %v3153_v7 = vld [vmem:[#allocation2 + $0x14] ss:$8 sps:$4 sm:$0xff]   ;;  %v3148_v8 = vld [vmem:[#allocation2 + $0x2c0] ss:$8 sps:$4 sm:$0xff]   ;;  %v3159_v11 = vld [vmem:[#allocation2 + $0x24] ss:$8 sps:$4 sm:$0xff]  }
  0x47   : > { %v3156_v9 = vld [vmem:[#allocation2 + $0x2d4] ss:$8 sps:$4 sm:$0xff]   ;;  %v3154_v13 = vld [vmem:[#allocation2 + $0x2d0] ss:$8 sps:$4 sm:$0xff]   ;;  %v3162_v14 = vld [vmem:[#allocation2 + $0x2e4] ss:$8 sps:$4 sm:$0xff]  }
  0x48   : > { %1248 = vperm.xlu1 %3058, %v3603_v2   ;;  %1251 = vperm.xlu0 %3057, %v3607_v4   ;;  %v3157_v15 = vld [vmem:[#allocation2 + $0x20] ss:$8 sps:$4 sm:$0xff]   ;;  %v3165_v16 = vld [vmem:[#allocation2 + $0x34] ss:$8 sps:$4 sm:$0xff]   ;;  %v3163_v21 = vld [vmem:[#allocation2 + $0x30] ss:$8 sps:$4 sm:$0xff]  }
  0x49   : > { %1189 = vmatpush1.bf16.msra.mxu0 %v3102_v24  ;;  %512 = vmatpush1.bf16.msra.mxu1 %v3123_v30  ;;  %v3160_v18 = vld [vmem:[#allocation2 + $0x2e0] ss:$8 sps:$4 sm:$0xff]   ;;  %v3168_v20 = vld [vmem:[#allocation2 + $0x2f4] ss:$8 sps:$4 sm:$0xff]   ;;  %v3171_v22 = vld [vmem:[#allocation2 + $0x44] ss:$8 sps:$4 sm:$0xff]  }
  0x4a   : > { %1190 = vmatprep.subr.bf16.mxu0 %v3106_v25  ;;  %513 = vmatprep.subr.bf16.mxu1 %v3127_v32  ;;  %v3174_v25 = vld [vmem:[#allocation2 + $0x304] ss:$8 sps:$4 sm:$0xff]   ;;  %v3169_v26 = vld [vmem:[#allocation2 + $0x40] ss:$8 sps:$4 sm:$0xff]   ;;  %v3177_v27 = vld [vmem:[#allocation2 + $0x54] ss:$8 sps:$4 sm:$0xff]  }
  0x4b   : > { %s2615_s18 = sshll.u32 %s302_s17, 5  ;;  %s2888_s29 = sshll.u32 %s3532_s28, 9 }
  0x4c   : > { %3059 = vset.pattern.permute.xlu1 %v3459_v23  ;;  %3060 = vset.pattern.permute.xlu0 %v3459_v23  ;;  %s3852_s19 = scalar_lea.vmem [#allocation5], %s2615_s18  ;;  %s3913_s14 = scalar_lea.hbm %s3986_s6, %s2888_s29 }
  0x4d   : > { %381 = vperm.xlu1 %3059, %v3605_v3   ;;  %384 = vperm.xlu0 %3060, %v3611_v5   ;;  %s2494_s23 = sshll.u32 %s3852_s19, 4  ;;  %s3917_s18 = scalar_lea.sflag [#allocation4], %s302_s17  ;;  %s3907_s23 = int_to_ptr.vmem [resolvable:$true] %s2494_s23 }
  0x4e   : > { %1191 = vmatpush1.bf16.msra.mxu0 %v3108_v29  ;;  %514 = vmatpush1.bf16.msra.mxu1 %v3129_v34  ;;  %v3180_v29 = vld [vmem:[#allocation2 + $0x314] ss:$8 sps:$4 sm:$0xff]   ;;  %v3178_v34 = vld [vmem:[#allocation2 + $0x310] ss:$8 sps:$4 sm:$0xff]   ;;  %s3385_s15 = scalar_lea.vmem %s3907_s23, 512  ;;  %p3998_p9 = scmp.ne.s32.totalorder %s3991_s11, 0 }
  0x4f   : > { %1192 = vmatprep.subr.bf16.mxu0 %v3112_v31  ;;  %515 = vmatprep.subr.bf16.mxu1 %v3133_v36  ;;  %v3175_v31 = vld [vmem:[#allocation2 + $0x50] ss:$8 sps:$4 sm:$0xff]   ;;  %v3181_v36 = vld [vmem:[#allocation2 + $0x60] ss:$8 sps:$4 sm:$0xff]   ;;  %p3386_p6 = scmp.ne.s32.totalorder %s3907_s23, %s3385_s15  ;;  %s3467_s16 = smov [#allocation5]  }
  0x51   : > { %3061 = vset.pattern.permute.xlu1 %v3460_v28  ;;  %387 = vperm.xlu0 %3060, %v3603_v2   ;;  %p3387_p10 = pnand %p3386_p6, %p3998_p9 }
  0x52   : > { %1426 = vperm.xlu1 %3061, %v3605_v3   ;;  %1193 = vmatpush1.bf16.msra.mxu0 %v3114_v33  ;;  %v3183_v33 = vld [vmem:[#allocation2 + $0x64] ss:$8 sps:$4 sm:$0xff]  }
  0x53   : > { %1194 = vmatprep.subr.bf16.mxu0 %v3118_v35  ;;  %516 = vmatpush1.bf16.msra.mxu1 %v3135_v39  ;;  %v3186_v35 = vld [vmem:[#allocation2 + $0x324] ss:$8 sps:$4 sm:$0xff]   ;;  %v3184_v39 = vld [vmem:[#allocation2 + $0x320] ss:$8 sps:$4 sm:$0xff]   ;;  %p3388_p12 = pneg %p3387_p10 }
  0x54   : > { %517 = vmatprep.subr.bf16.mxu1 %v3139_v40 }
  0x55   : > { %3063 = vset.pattern.permute.xlu0 %v3460_v28 }
  0x56   : > { %1429 = vperm.xlu1 %3061, %v3611_v5   ;;  %1432 = vperm.xlu0 %3063, %v3603_v2  }
  0x57   : > { %1195 = vmatpush1.bf16.msra.mxu0 %v3120_v37  ;;  %518 = vmatpush1.bf16.msra.mxu1 %v3141_v41  ;;  %v3189_v37 = vld [vmem:[#allocation2 + $0x74] ss:$8 sps:$4 sm:$0xff]  }
  0x58   : > { %1364 = vmatprep.subr.bf16.mxu0 %v3126_v38  ;;  %636 = vmatprep.subr.bf16.mxu1 %v3147_v42  ;;  %v3192_v41 = vld [vmem:[#allocation2 + $0x334] ss:$8 sps:$4 sm:$0xff]   ;;  %v3187_v42 = vld [vmem:[#allocation2 + $0x70] ss:$8 sps:$4 sm:$0xff]  }
  0x5a   : > { %3062 = vset.pattern.permute.xlu1 %v3459_v23  ;;  %3066 = vset.pattern.permute.xlu0 %v3457_v1  ;;  %v3166_v23 = vld [vmem:[#allocation2 + $0x2f0] ss:$8 sps:$4 sm:$0xff]  }
  0x5b   : > { %390 = vperm.xlu1 %3062, %v3607_v4   ;;  %342 = vperm.xlu0 %3066, %v3611_v5  }
  0x5f   : > { %3064 = vset.pattern.permute.xlu1 %v3460_v28  ;;  %345 = vperm.xlu0 %3066, %v3603_v2   ;;  %v3172_v28 = vld [vmem:[#allocation2 + $0x300] ss:$8 sps:$4 sm:$0xff]  }
  0x60   : > { %1435 = vperm.xlu1 %3064, %v3607_v4  }
  0x63   : > { %3069 = vset.pattern.permute.xlu0 %v3461_v43 }
  0x64   : > { %3065 = vset.pattern.permute.xlu1 %v3457_v1  ;;  %1616 = vperm.xlu0 %3069, %v3603_v2  }
  0x65   : > { %339 = vperm.xlu1 %3065, %v3605_v3  }
  0x68   : > { %3072 = vset.pattern.permute.xlu0 %v3462_v44 }
  0x69   : > { %3067 = vset.pattern.permute.xlu1 %v3461_v43  ;;  %693 = vperm.xlu0 %3072, %v3611_v5  }
  0x6a   : > { %1610 = vperm.xlu1 %3067, %v3605_v3  }
  0x6d   : > { %696 = vperm.xlu0 %3072, %v3603_v2  }
  0x6e   : > { %1613 = vperm.xlu1 %3067, %v3611_v5  }
  0x71   : > { %3075 = vset.pattern.permute.xlu0 %v3463_v45 }
  0x72   : > { %3068 = vset.pattern.permute.xlu1 %v3457_v1  ;;  %1800 = vperm.xlu0 %3075, %v3603_v2  }
  0x73   : > { %348 = vperm.xlu1 %3068, %v3607_v4  }
  0x76   : > { %3078 = vset.pattern.permute.xlu0 %v3464_v46 }
  0x77   : > { %3070 = vset.pattern.permute.xlu1 %v3461_v43  ;;  %877 = vperm.xlu0 %3078, %v3611_v5   ;;  %v3195_v43 = vld [vmem:[#allocation2 + $0x104] ss:$8 sps:$4 sm:$0xff]  }
  0x78   : > { %1619 = vperm.xlu1 %3070, %v3607_v4  }
  0x7b   : > { %880 = vperm.xlu0 %3078, %v3603_v2  }
  0x7c   : > { %3071 = vset.pattern.permute.xlu1 %v3462_v44 }
  0x7d   : > { %690 = vperm.xlu1 %3071, %v3605_v3  }
  0x7f   : > { %3081 = vset.pattern.permute.xlu0 %v3465_v47 }
  0x80   : > { %1984 = vperm.xlu0 %3081, %v3603_v2   ;;  %v3142_v2 = vld [vmem:[#allocation2 + $0x2b0] ss:$8 sps:$4 sm:$0xff]  }
  0x81   : > { %3073 = vset.pattern.permute.xlu1 %v3463_v45 }
  0x82   : > { %1794 = vperm.xlu1 %3073, %v3605_v3  }
  0x84   : > { %3083 = vset.pattern.permute.xlu0 %v3457_v1 }
  0x86   : > { %1797 = vperm.xlu1 %3073, %v3611_v5  }
  0x8a   : > { %3074 = vset.pattern.permute.xlu1 %v3462_v44 }
  0x8b   : > { %699 = vperm.xlu1 %3074, %v3607_v4  }
  0x8f   : > { %3076 = vset.pattern.permute.xlu1 %v3463_v45  ;;  %v3190_v45 = vld [vmem:[#allocation2 + $0x330] ss:$8 sps:$4 sm:$0xff]  }
  0x90   : > { %1803 = vperm.xlu1 %3076, %v3607_v4  }
  0x94   : > { %3077 = vset.pattern.permute.xlu1 %v3464_v46 }
  0x95   : > { %874 = vperm.xlu1 %3077, %v3605_v3  }
  0x99   : > { %3079 = vset.pattern.permute.xlu1 %v3465_v47 }
  0x9a   : > { %1978 = vperm.xlu1 %3079, %v3605_v3   ;;  %v3150_v3 = vld [vmem:[#allocation2 + $0x2c4] ss:$8 sps:$4 sm:$0xff]  }
  0x9e   : > { %1981 = vperm.xlu1 %3079, %v3611_v5  }
  0xa2   : > { %3080 = vset.pattern.permute.xlu1 %v3464_v46  ;;  %v3198_v46 = vld [vmem:[#allocation2 + $0x344] ss:$8 sps:$4 sm:$0xff]  }
  0xa3   : > { %883 = vperm.xlu1 %3080, %v3607_v4  }
  0xa7   : > { %3082 = vset.pattern.permute.xlu1 %v3465_v47  ;;  %v3193_v47 = vld [vmem:[#allocation2 + $0x100] ss:$8 sps:$4 sm:$0xff]  }
  0xa8   : > { %1987 = vperm.xlu1 %3082, %v3607_v4  }
  0xac   : > { %3084 = vset.pattern.permute.xlu1 %v3457_v1 }
  0xba   : > { %v1059_v49 = vpop.permute.xlu0 %1058  ;;  %v1065_v50 = vpop.permute.xlu1 %1064 }
  0xbb   : > { %vm1069_vm0 = vcmp.eq.s32.totalorder %v3657_v51, %v1059_v49  ;;  %vm1071_vm3 = vcmp.eq.s32.totalorder %v3657_v51, %v1065_v50  ;;  %v3201_v49 = vld [vmem:[#allocation2 + $0x114] ss:$8 sps:$4 sm:$0xff]  }
  0xbe   : > { %v1062_v52 = vpop.permute.xlu0 %1061  ;;  %v1068_v54 = vpop.permute.xlu1 %1067 }
  0xbf   : > { %vm1070_vm1 = vcmp.eq.s32.totalorder %v3657_v51, %v1062_v52  ;;  %vm1072_vm4 = vcmp.eq.s32.totalorder %v3657_v51, %v1068_v54  ;;  %v3196_v52 = vld [vmem:[#allocation2 + $0x340] ss:$8 sps:$4 sm:$0xff]   ;;  %v3204_v54 = vld [vmem:[#allocation2 + $0x354] ss:$8 sps:$4 sm:$0xff]  }
  0xc0   : > { %vm2738_vm2 = vmpackc.low %vm1070_vm1, %vm1069_vm0 }
  0xc1   : > { %2739 = vmatmul.mubr.msk.bf16.vlgmr.msra.gmra.mrb[0].mxu0 %vm2738_vm2, %v3466_v56  ;;  %vm2740_vm5 = vmpackc.low %vm1072_vm4, %vm1071_vm3 }
  0xc2   : > { %1365 = vmatpush1.bf16.msra.mxu0 %v3124_v53  ;;  %1222 = vmatprep.mubr.bf16.mxu0 %v3457_v1 }
  0xc3   : > { %v3665_v58 = vpop.permute.xlu1 %1245  ;;  %1366 = vmatprep.subr.bf16.mxu0 %v3132_v55  ;;  %v3667_v59 = vpop.permute.xlu0 %1242  ;;  %v3199_v55 = vld [vmem:[#allocation2 + $0x110] ss:$8 sps:$4 sm:$0xff]  }
  0xc4   : > { %vm1254_vm10 = vcmp.eq.s32.totalorder %v3657_v51, %v3665_v58  ;;  %vm1253_vm11 = vcmp.eq.s32.totalorder %v3657_v51, %v3667_v59  ;;  %v3202_v58 = vld [vmem:[#allocation2 + $0x350] ss:$8 sps:$4 sm:$0xff]  }
  0xc5   : > { %vm2762_vm14 = vmpackc.low %vm1254_vm10, %vm1253_vm11 }
  0xc6   : > { %1367 = vmatpush1.bf16.msra.mxu0 %v3130_v57  ;;  %v3207_v57 = vld [vmem:[#allocation2 + $0x124] ss:$8 sps:$4 sm:$0xff]  }
  0xc7   : > { %v3669_v62 = vpop.permute.xlu1 %1248  ;;  %1368 = vmatprep.subr.bf16.mxu0 %v3138_v60  ;;  %v3671_v63 = vpop.permute.xlu0 %1251  ;;  %v3210_v60 = vld [vmem:[#allocation2 + $0x364] ss:$8 sps:$4 sm:$0xff]  }
  0xc8   : > { %vm1255_vm15 = vcmp.eq.s32.totalorder %v3657_v51, %v3669_v62  ;;  %vm1256_vm0 = vcmp.eq.s32.totalorder %v3657_v51, %v3671_v63  ;;  %v3213_v62 = vld [vmem:[#allocation2 + $0x134] ss:$8 sps:$4 sm:$0xff]   ;;  %v3208_v63 = vld [vmem:[#allocation2 + $0x360] ss:$8 sps:$4 sm:$0xff]  }
  0xc9   : > { %2741 = vmatmul.mubr.msk.bf16.gmra.mrb[4].mxu0 %vm2740_vm5, %v3466_v56  ;;  %vm2764_vm1 = vmpackc.low %vm1256_vm0, %vm1255_vm15 }
  0xca   : > { %1369 = vmatpush1.bf16.msra.mxu0 %v3136_v61  ;;  %1396 = vmatprep.mubr.bf16.mxu0 %v3457_v1  ;;  %v3205_v61 = vld [vmem:[#allocation2 + $0x120] ss:$8 sps:$4 sm:$0xff]  }
  0xcb   : > { %1370 = vmatprep.subr.bf16.mxu0 %v3144_v0  ;;  %v3216_v0 = vld [vmem:[#allocation2 + $0x374] ss:$8 sps:$4 sm:$0xff]  }
  0xcc   : > { %v382_v4 = vpop.permute.xlu1 %381  ;;  %v385_v5 = vpop.permute.xlu0 %384 }
  0xcd   : > { %vm392_vm6 = vcmp.eq.s32.totalorder %v3657_v51, %v382_v4  ;;  %vm393_vm7 = vcmp.eq.s32.totalorder %v3657_v51, %v385_v5  ;;  %v3214_v4 = vld [vmem:[#allocation2 + $0x370] ss:$8 sps:$4 sm:$0xff]  }
  0xce   : > { %vm2646_vm8 = vmpackc.low %vm393_vm7, %vm392_vm6  ;;  %1371 = vmatpush1.bf16.msra.mxu0 %v3142_v2  ;;  %v3211_v2 = vld [vmem:[#allocation2 + $0x130] ss:$8 sps:$4 sm:$0xff]  }
  0xcf   : > { %2647 = vmatmul.mubr.msk.bf16.vlgmr.msra.gmra.mrb[0].mxu1 %vm2646_vm8, %v3466_v56  ;;  %1372 = vmatprep.subr.bf16.mxu0 %v3150_v3  ;;  %v3219_v3 = vld [vmem:[#allocation2 + $0x144] ss:$8 sps:$4 sm:$0xff]  }
  0xd0   : > { %637 = vmatpush1.bf16.msra.mxu1 %v3145_v6  ;;  %545 = vmatprep.mubr.bf16.mxu1 %v3457_v1  ;;  %v388_v19 = vpop.permute.xlu0 %387  ;;  %v3222_v6 = vld [vmem:[#allocation2 + $0x384] ss:$8 sps:$4 sm:$0xff]  }
  0xd1   : > { %638 = vmatprep.subr.bf16.mxu1 %v3153_v7  ;;  %v3679_v12 = vpop.permute.xlu1 %1426  ;;  %vm394_vm9 = vcmp.eq.s32.totalorder %v3657_v51, %v388_v19  ;;  %v3217_v7 = vld [vmem:[#allocation2 + $0x140] ss:$8 sps:$4 sm:$0xff]   ;;  %v3237_v19 = vld [vmem:[#allocation2 + $0x174] ss:$8 sps:$4 sm:$0xff]  }
  0xd2   : > { %1373 = vmatpush1.bf16.msra.mxu0 %v3148_v8  ;;  %vm1437_vm8 = vcmp.eq.s32.totalorder %v3657_v51, %v3679_v12  ;;  %v3225_v8 = vld [vmem:[#allocation2 + $0x154] ss:$8 sps:$4 sm:$0xff]   ;;  %v3226_v12 = vld [vmem:[#allocation2 + $0x390] ss:$8 sps:$4 sm:$0xff]  }
  0xd3   : > { %1374 = vmatprep.subr.bf16.mxu0 %v3156_v9  ;;  %v3220_v9 = vld [vmem:[#allocation2 + $0x380] ss:$8 sps:$4 sm:$0xff]  }
  0xd4   : > { %639 = vmatpush1.bf16.msra.mxu1 %v3151_v10  ;;  %v3228_v10 = vld [vmem:[#allocation2 + $0x394] ss:$8 sps:$4 sm:$0xff]  }
  0xd5   : > { %640 = vmatprep.subr.bf16.mxu1 %v3159_v11  ;;  %v3681_v17 = vpop.permute.xlu1 %1429  ;;  %v3693_v32 = vpop.permute.xlu0 %1432  ;;  %v3223_v11 = vld [vmem:[#allocation2 + $0x150] ss:$8 sps:$4 sm:$0xff]  }
  0xd6   : > { %1375 = vmatpush1.bf16.msra.mxu0 %v3154_v13 }
  0xd7   : > { %1376 = vmatprep.subr.bf16.mxu0 %v3162_v14 }
  0xd8   : > { %641 = vmatpush1.bf16.msra.mxu1 %v3157_v15  ;;  %v3231_v15 = vld [vmem:[#allocation2 + $0x164] ss:$8 sps:$4 sm:$0xff]  }
  0xd9   : > { %642 = vmatprep.subr.bf16.mxu1 %v3165_v16  ;;  %v3234_v16 = vld [vmem:[#allocation2 + $0x3a4] ss:$8 sps:$4 sm:$0xff]  }
  0xda   : > { %1377 = vmatpush1.bf16.msra.mxu0 %v3160_v18  ;;  %v391_v24 = vpop.permute.xlu1 %390  ;;  %v343_v40 = vpop.permute.xlu0 %342 }
  0xdb   : > { %1378 = vmatprep.subr.bf16.mxu0 %v3168_v20  ;;  %vm395_vm12 = vcmp.eq.s32.totalorder %v3657_v51, %v391_v24  ;;  %vm351_vm3 = vcmp.eq.s32.totalorder %v3657_v51, %v343_v40  ;;  %v3232_v20 = vld [vmem:[#allocation2 + $0x3a0] ss:$8 sps:$4 sm:$0xff]   ;;  %v3243_v24 = vld [vmem:[#allocation2 + $0x184] ss:$8 sps:$4 sm:$0xff]  }
  0xdc   : > { %643 = vmatpush1.bf16.msra.mxu1 %v3163_v21  ;;  %vm2648_vm13 = vmpackc.low %vm395_vm12, %vm394_vm9  ;;  %vm1438_vm9 = vcmp.eq.s32.totalorder %v3657_v51, %v3681_v17  ;;  %vm1439_vm12 = vcmp.eq.s32.totalorder %v3657_v51, %v3693_v32  ;;  %v3229_v17 = vld [vmem:[#allocation2 + $0x160] ss:$8 sps:$4 sm:$0xff]   ;;  %v3252_v32 = vld [vmem:[#allocation2 + $0x3d4] ss:$8 sps:$4 sm:$0xff]  }
  0xdd   : > { %644 = vmatprep.subr.bf16.mxu1 %v3171_v22  ;;  %2649 = vmatmul.mubr.msk.bf16.gmra.mrb[4].mxu1 %vm2648_vm13, %v3466_v56  ;;  %vm2786_vm10 = vmpackc.low %vm1438_vm9, %vm1437_vm8  ;;  %v3240_v22 = vld [vmem:[#allocation2 + $0x3b4] ss:$8 sps:$4 sm:$0xff]   ;;  %v3256_v40 = vld [vmem:[#allocation2 + $0x3e0] ss:$8 sps:$4 sm:$0xff]  }
  0xde   : > { %1379 = vmatpush1.bf16.msra.mxu0 %v3166_v23  ;;  %668 = vmatprep.mubr.bf16.mxu1 %v3457_v1  ;;  %v346_v53 = vpop.permute.xlu0 %345  ;;  %v3235_v23 = vld [vmem:[#allocation2 + $0x170] ss:$8 sps:$4 sm:$0xff]  }
  0xdf   : > { %1548 = vmatprep.subr.bf16.mxu0 %v3174_v25  ;;  %v3691_v30 = vpop.permute.xlu1 %1435  ;;  %vm352_vm5 = vcmp.eq.s32.totalorder %v3657_v51, %v346_v53  ;;  %v3238_v25 = vld [vmem:[#allocation2 + $0x3b0] ss:$8 sps:$4 sm:$0xff]   ;;  %v3273_v53 = vld [vmem:[#allocation2 + $0x1d4] ss:$8 sps:$4 sm:$0xff]  }
  0xe0   : > { %645 = vmatpush1.bf16.msra.mxu1 %v3169_v26  ;;  %vm1440_vm11 = vcmp.eq.s32.totalorder %v3657_v51, %v3691_v30  ;;  %v3244_v30 = vld [vmem:[#allocation2 + $0x3c0] ss:$8 sps:$4 sm:$0xff]  }
  0xe1   : > { %2763 = vmatmul.mubr.msk.bf16.vlgmr.msra.gmra.mrb[0].mxu0 %vm2762_vm14, %v3466_v56  ;;  %646 = vmatprep.subr.bf16.mxu1 %v3177_v27  ;;  %vm2788_vm13 = vmpackc.low %vm1440_vm11, %vm1439_vm12  ;;  %v3246_v27 = vld [vmem:[#allocation2 + $0x3c4] ss:$8 sps:$4 sm:$0xff]  }
  0xe2   : > { %1549 = vmatpush1.bf16.msra.mxu0 %v3172_v28  ;;  %1406 = vmatprep.mubr.bf16.mxu0 %v3457_v1  ;;  %v3241_v28 = vld [vmem:[#allocation2 + $0x180] ss:$8 sps:$4 sm:$0xff]  }
  0xe3   : > { %1550 = vmatprep.subr.bf16.mxu0 %v3180_v29  ;;  %v3721_v13 = vpop.permute.xlu0 %1616  ;;  %v3249_v29 = vld [vmem:[#allocation2 + $0x194] ss:$8 sps:$4 sm:$0xff]  }
  0xe4   : > { %647 = vmatpush1.bf16.msra.mxu1 %v3175_v31  ;;  %v340_v38 = vpop.permute.xlu1 %339  ;;  %vm1623_vm8 = vcmp.eq.s32.totalorder %v3657_v51, %v3721_v13  ;;  %v3297_v13 = vld [vmem:[#allocation2 + $0x464] ss:$8 sps:$4 sm:$0xff]  }
  0xe5   : > { %648 = vmatprep.subr.bf16.mxu1 %v3183_v33  ;;  %vm350_vm2 = vcmp.eq.s32.totalorder %v3657_v51, %v340_v38  ;;  %v3247_v33 = vld [vmem:[#allocation2 + $0x190] ss:$8 sps:$4 sm:$0xff]   ;;  %v3253_v38 = vld [vmem:[#allocation2 + $0x1a0] ss:$8 sps:$4 sm:$0xff]  }
  0xe6   : > { %1551 = vmatpush1.bf16.msra.mxu0 %v3178_v34  ;;  %vm2666_vm4 = vmpackc.low %vm351_vm3, %vm350_vm2 }
  0xe7   : > { %1552 = vmatprep.subr.bf16.mxu0 %v3186_v35  ;;  %v3255_v35 = vld [vmem:[#allocation2 + $0x1a4] ss:$8 sps:$4 sm:$0xff]  }
  0xe8   : > { %649 = vmatpush1.bf16.msra.mxu1 %v3181_v36  ;;  %v694_v21 = vpop.permute.xlu0 %693  ;;  %v3250_v36 = vld [vmem:[#allocation2 + $0x3d0] ss:$8 sps:$4 sm:$0xff]  }
  0xe9   : > { %2765 = vmatmul.mubr.msk.bf16.gmra.mrb[4].mxu0 %vm2764_vm1, %v3466_v56  ;;  %650 = vmatprep.subr.bf16.mxu1 %v3189_v37  ;;  %v3704_v44 = vpop.permute.xlu1 %1610  ;;  %vm702_vm15 = vcmp.eq.s32.totalorder %v3657_v51, %v694_v21  ;;  %v3258_v37 = vld [vmem:[#allocation2 + $0x3e4] ss:$8 sps:$4 sm:$0xff]   ;;  %v3307_v21 = vld [vmem:[#allocation2 + $0x4a0] ss:$8 sps:$4 sm:$0xff]  }
  0xea   : > { %1553 = vmatpush1.bf16.msra.mxu0 %v3184_v39  ;;  %1580 = vmatprep.mubr.bf16.mxu0 %v3457_v1  ;;  %v3261_v39 = vld [vmem:[#allocation2 + $0x1b4] ss:$8 sps:$4 sm:$0xff]  }
  0xeb   : > { %1554 = vmatprep.subr.bf16.mxu0 %v3192_v41 }
  0xec   : > { %651 = vmatpush1.bf16.msra.mxu1 %v3187_v42  ;;  %v697_v31 = vpop.permute.xlu0 %696  ;;  %v3264_v42 = vld [vmem:[#allocation2 + $0x3f4] ss:$8 sps:$4 sm:$0xff]  }
  0xed   : > { %812 = vmatprep.subr.bf16.mxu1 %v3195_v43  ;;  %v3707_v50 = vpop.permute.xlu1 %1613  ;;  %vm703_vm2 = vcmp.eq.s32.totalorder %v3657_v51, %v697_v31  ;;  %v3259_v43 = vld [vmem:[#allocation2 + $0x1b0] ss:$8 sps:$4 sm:$0xff]  }
  0xee   : > { %1555 = vmatpush1.bf16.msra.mxu0 %v3190_v45  ;;  %v3267_v45 = vld [vmem:[#allocation2 + $0x1c4] ss:$8 sps:$4 sm:$0xff]   ;;  %v3322_v31 = vld [vmem:[#allocation2 + $0x4f0] ss:$8 sps:$4 sm:$0xff]  }
  0xef   : > { %2667 = vmatmul.mubr.msk.bf16.vlgmr.msra.gmra.mrb[0].mxu1 %vm2666_vm4, %v3466_v56  ;;  %1556 = vmatprep.subr.bf16.mxu0 %v3198_v46  ;;  %v3262_v46 = vld [vmem:[#allocation2 + $0x3f0] ss:$8 sps:$4 sm:$0xff]   ;;  %vm1621_vm4 = vcmp.eq.s32.totalorder %v3657_v51, %v3704_v44 }
  0xf0   : > { %813 = vmatpush1.bf16.msra.mxu1 %v3193_v47  ;;  %678 = vmatprep.mubr.bf16.mxu1 %v3457_v1  ;;  %v3270_v47 = vld [vmem:[#allocation2 + $0x404] ss:$8 sps:$4 sm:$0xff]   ;;  %v3274_v44 = vld [vmem:[#allocation2 + $0x410] ss:$8 sps:$4 sm:$0xff]  }
  0xf1   : > { %814 = vmatprep.subr.bf16.mxu1 %v3201_v49  ;;  %v3265_v49 = vld [vmem:[#allocation2 + $0x1c0] ss:$8 sps:$4 sm:$0xff]  }
  0xf2   : > { %1557 = vmatpush1.bf16.msra.mxu0 %v3196_v52  ;;  %v349_v59 = vpop.permute.xlu1 %348 }
  0xf3   : > { %1558 = vmatprep.subr.bf16.mxu0 %v3204_v54  ;;  %vm353_vm6 = vcmp.eq.s32.totalorder %v3657_v51, %v349_v59  ;;  %v3268_v54 = vld [vmem:[#allocation2 + $0x400] ss:$8 sps:$4 sm:$0xff]   ;;  %v3279_v59 = vld [vmem:[#allocation2 + $0x1e4] ss:$8 sps:$4 sm:$0xff]  }
  0xf4   : > { %815 = vmatpush1.bf16.msra.mxu1 %v3199_v55  ;;  %vm2668_vm7 = vmpackc.low %vm353_vm6, %vm352_vm5  ;;  %vm1622_vm5 = vcmp.eq.s32.totalorder %v3657_v51, %v3707_v50  ;;  %v3276_v55 = vld [vmem:[#allocation2 + $0x414] ss:$8 sps:$4 sm:$0xff]   ;;  %v3282_v50 = vld [vmem:[#allocation2 + $0x424] ss:$8 sps:$4 sm:$0xff]  }
  0xf5   : > { %816 = vmatprep.subr.bf16.mxu1 %v3207_v57  ;;  %vm2810_vm6 = vmpackc.low %vm1622_vm5, %vm1621_vm4  ;;  %v3271_v57 = vld [vmem:[#allocation2 + $0x1d0] ss:$8 sps:$4 sm:$0xff]  }
  0xf6   : > { %1559 = vmatpush1.bf16.msra.mxu0 %v3202_v58  ;;  %v3749_v58 = vpop.permute.xlu0 %1800 }
  0xf7   : > { %1560 = vmatprep.subr.bf16.mxu0 %v3210_v60  ;;  %2669 = vmatmul.mubr.msk.bf16.gmra.mrb[4].mxu1 %vm2668_vm7, %v3466_v56  ;;  %v3715_v5 = vpop.permute.xlu1 %1619  ;;  %vm1807_vm4 = vcmp.eq.s32.totalorder %v3657_v51, %v3749_v58 }
  0xf8   : > { %817 = vmatpush1.bf16.msra.mxu1 %v3205_v61  ;;  %844 = vmatprep.mubr.bf16.mxu1 %v3457_v1  ;;  %vm1624_vm7 = vcmp.eq.s32.totalorder %v3657_v51, %v3715_v5  ;;  %v3277_v61 = vld [vmem:[#allocation2 + $0x1e0] ss:$8 sps:$4 sm:$0xff]   ;;  %v3286_v5 = vld [vmem:[#allocation2 + $0x430] ss:$8 sps:$4 sm:$0xff]  }
  0xf9   : > { %818 = vmatprep.subr.bf16.mxu1 %v3213_v62  ;;  %v3285_v62 = vld [vmem:[#allocation2 + $0x1f4] ss:$8 sps:$4 sm:$0xff]   ;;  %vm2812_vm9 = vmpackc.low %vm1624_vm7, %vm1623_vm8 }
  0xfa   : > { %1561 = vmatpush1.bf16.msra.mxu0 %v3208_v63  ;;  %v3280_v63 = vld [vmem:[#allocation2 + $0x420] ss:$8 sps:$4 sm:$0xff]  }
  0xfb   : > { %1562 = vmatprep.subr.bf16.mxu0 %v3216_v0  ;;  %v878_v0 = vpop.permute.xlu0 %877 }
  0xfc   : > { %819 = vmatpush1.bf16.msra.mxu1 %v3211_v2  ;;  %v691_v14 = vpop.permute.xlu1 %690  ;;  %v3288_v2 = vld [vmem:[#allocation2 + $0x434] ss:$8 sps:$4 sm:$0xff]   ;;  %vm886_vm11 = vcmp.eq.s32.totalorder %v3657_v51, %v878_v0 }
  0xfd   : > { %820 = vmatprep.subr.bf16.mxu1 %v3219_v3  ;;  %vm701_vm14 = vcmp.eq.s32.totalorder %v3657_v51, %v691_v14  ;;  %v3283_v3 = vld [vmem:[#allocation2 + $0x1f0] ss:$8 sps:$4 sm:$0xff]   ;;  %v3295_v14 = vld [vmem:[#allocation2 + $0x460] ss:$8 sps:$4 sm:$0xff]  }
  0xfe   : > { %1563 = vmatpush1.bf16.msra.mxu0 %v3214_v4  ;;  %vm2690_vm0 = vmpackc.low %vm702_vm15, %vm701_vm14 }
  0xff   : > { %1732 = vmatprep.subr.bf16.mxu0 %v3222_v6  ;;  %v3291_v6 = vld [vmem:[#allocation2 + $0x444] ss:$8 sps:$4 sm:$0xff]  }
 0x100   : > { %821 = vmatpush1.bf16.msra.mxu1 %v3217_v7  ;;  %v3289_v7 = vld [vmem:[#allocation2 + $0x440] ss:$8 sps:$4 sm:$0xff]  }
 0x101   : > { %2787 = vmatmul.mubr.msk.bf16.vlgmr.msra.gmra.mrb[0].mxu0 %vm2786_vm10, %v3466_v56  ;;  %822 = vmatprep.subr.bf16.mxu1 %v3225_v8  ;;  %v3729_v18 = vpop.permute.xlu1 %1794 }
 0x102   : > { %1733 = vmatpush1.bf16.msra.mxu0 %v3220_v9  ;;  %1590 = vmatprep.mubr.bf16.mxu0 %v3457_v1  ;;  %v881_v9 = vpop.permute.xlu0 %880 }
 0x103   : > { %1734 = vmatprep.subr.bf16.mxu0 %v3228_v10  ;;  %v3294_v10 = vld [vmem:[#allocation2 + $0x454] ss:$8 sps:$4 sm:$0xff]   ;;  %vm887_vm14 = vcmp.eq.s32.totalorder %v3657_v51, %v881_v9 }
 0x104   : > { %823 = vmatpush1.bf16.msra.mxu1 %v3223_v11  ;;  %v3292_v11 = vld [vmem:[#allocation2 + $0x450] ss:$8 sps:$4 sm:$0xff]  }
 0x105   : > { %824 = vmatprep.subr.bf16.mxu1 %v3231_v15  ;;  %v3734_v26 = vpop.permute.xlu1 %1797  ;;  %v3300_v15 = vld [vmem:[#allocation2 + $0x474] ss:$8 sps:$4 sm:$0xff]  }
 0x106   : > { %1735 = vmatpush1.bf16.msra.mxu0 %v3226_v12  ;;  %v3298_v12 = vld [vmem:[#allocation2 + $0x470] ss:$8 sps:$4 sm:$0xff]  }
 0x107   : > { %1736 = vmatprep.subr.bf16.mxu0 %v3234_v16  ;;  %v3303_v16 = vld [vmem:[#allocation2 + $0x484] ss:$8 sps:$4 sm:$0xff]  }
 0x108   : > { %825 = vmatpush1.bf16.msra.mxu1 %v3229_v17  ;;  %v3301_v17 = vld [vmem:[#allocation2 + $0x480] ss:$8 sps:$4 sm:$0xff]  }
 0x109   : > { %826 = vmatprep.subr.bf16.mxu1 %v3237_v19  ;;  %2789 = vmatmul.mubr.msk.bf16.gmra.mrb[4].mxu0 %vm2788_vm13, %v3466_v56  ;;  %v3306_v19 = vld [vmem:[#allocation2 + $0x494] ss:$8 sps:$4 sm:$0xff]  }
 0x10a   : > { %1737 = vmatpush1.bf16.msra.mxu0 %v3232_v20  ;;  %1764 = vmatprep.mubr.bf16.mxu0 %v3457_v1  ;;  %v700_v34 = vpop.permute.xlu1 %699  ;;  %v3304_v20 = vld [vmem:[#allocation2 + $0x490] ss:$8 sps:$4 sm:$0xff]  }
 0x10b   : > { %1738 = vmatprep.subr.bf16.mxu0 %v3240_v22  ;;  %vm704_vm1 = vcmp.eq.s32.totalorder %v3657_v51, %v700_v34  ;;  %v3312_v22 = vld [vmem:[#allocation2 + $0x4b4] ss:$8 sps:$4 sm:$0xff]   ;;  %v3325_v34 = vld [vmem:[%s3984_s4 + $0x40] sm:$0xff]  }
 0x10c   : > { %827 = vmatpush1.bf16.msra.mxu1 %v3235_v23  ;;  %vm2692_vm3 = vmpackc.low %vm704_vm1, %vm703_vm2  ;;  %vm1806_vm1 = vcmp.eq.s32.totalorder %v3657_v51, %v3734_v26  ;;  %v3310_v23 = vld [vmem:[#allocation2 + $0x4b0] ss:$8 sps:$4 sm:$0xff]   ;;  %v3318_v26 = vld [vmem:[#allocation2 + $0x4d4] ss:$8 sps:$4 sm:$0xff]  }
 0x10d   : > { %996 = vmatprep.subr.bf16.mxu1 %v3243_v24  ;;  %v3315_v24 = vld [vmem:[#allocation2 + $0x4c4] ss:$8 sps:$4 sm:$0xff]  }
 0x10e   : > { %1739 = vmatpush1.bf16.msra.mxu0 %v3238_v25  ;;  %v3313_v25 = vld [vmem:[#allocation2 + $0x4c0] ss:$8 sps:$4 sm:$0xff]  }
 0x10f   : > { %2691 = vmatmul.mubr.msk.bf16.vlgmr.msra.gmra.mrb[0].mxu1 %vm2690_vm0, %v3466_v56  ;;  %1740 = vmatprep.subr.bf16.mxu0 %v3246_v27  ;;  %v3741_v41 = vpop.permute.xlu1 %1803  ;;  %vm1805_vm0 = vcmp.eq.s32.totalorder %v3657_v51, %v3729_v18  ;;  %v3309_v18 = vld [vmem:[#allocation2 + $0x4a4] ss:$8 sps:$4 sm:$0xff]   ;;  %v3316_v27 = vld [vmem:[#allocation2 + $0x4d0] ss:$8 sps:$4 sm:$0xff]  }
 0x110   : > { %997 = vmatpush1.bf16.msra.mxu1 %v3241_v28  ;;  %854 = vmatprep.mubr.bf16.mxu1 %v3457_v1  ;;  %vm2834_vm2 = vmpackc.low %vm1806_vm1, %vm1805_vm0  ;;  %v3321_v28 = vld [vmem:[#allocation2 + $0x4e4] ss:$8 sps:$4 sm:$0xff]  }
 0x111   : > { %998 = vmatprep.subr.bf16.mxu1 %v3249_v29  ;;  %v3319_v29 = vld [vmem:[#allocation2 + $0x4e0] ss:$8 sps:$4 sm:$0xff]  }
 0x112   : > { %1741 = vmatpush1.bf16.msra.mxu0 %v3244_v30  ;;  %v3324_v30 = vld [vmem:[#allocation2 + $0x4f4] ss:$8 sps:$4 sm:$0xff]  }
 0x113   : > { %1742 = vmatprep.subr.bf16.mxu0 %v3252_v32 }
 0x114   : > { %999 = vmatpush1.bf16.msra.mxu1 %v3247_v33  ;;  %v875_v52 = vpop.permute.xlu1 %874  ;;  %v1985_v33 = vpop.permute.xlu0 %1984 }
 0x115   : > { %1000 = vmatprep.subr.bf16.mxu1 %v3255_v35  ;;  %vm885_vm10 = vcmp.eq.s32.totalorder %v3657_v51, %v875_v52  ;;  %v3326_v35 = vld [vmem:[%s3984_s4] sm:$0xff]  }
 0x116   : > { %1743 = vmatpush1.bf16.msra.mxu0 %v3250_v36  ;;  %vm2714_vm12 = vmpackc.low %vm886_vm11, %vm885_vm10  ;;  %vm1991_vm10 = vcmp.eq.s32.totalorder %v3657_v51, %v1985_v33  ;;  %v3327_v36 = vld [vmem:[%s3984_s4 + $0x48] sm:$0xff]  }
 0x117   : > { %1744 = vmatprep.subr.bf16.mxu0 %v3258_v37  ;;  %2693 = vmatmul.mubr.msk.bf16.gmra.mrb[4].mxu1 %vm2692_vm3, %v3466_v56  ;;  %vm1808_vm3 = vcmp.eq.s32.totalorder %v3657_v51, %v3741_v41  ;;  %v3330_v37 = vld [vmem:[%s3984_s4 + $0x10] sm:$0xff]   ;;  %v3334_v41 = vld [vmem:[%s3984_s4 + $0x20] sm:$0xff]  }
 0x118   : > { %1001 = vmatpush1.bf16.msra.mxu1 %v3253_v38  ;;  %1028 = vmatprep.mubr.bf16.mxu1 %v3457_v1  ;;  %vm2836_vm5 = vmpackc.low %vm1808_vm3, %vm1807_vm4  ;;  %v3331_v38 = vld [vmem:[%s3984_s4 + $0x58] sm:$0xff]  }
 0x119   : > { %1002 = vmatprep.subr.bf16.mxu1 %v3261_v39  ;;  %v3752_v60 = vpop.permute.xlu1 %1978  ;;  %v3332_v39 = vld [vmem:[%s3984_s4 + $0x18] sm:$0xff]  }
 0x11a   : > { %1745 = vmatpush1.bf16.msra.mxu0 %v3256_v40  ;;  %v3333_v40 = vld [vmem:[%s3984_s4 + $0x60] sm:$0xff]  }
 0x11b   : > { %1746 = vmatprep.subr.bf16.mxu0 %v3264_v42  ;;  %v3335_v42 = vld [vmem:[%s3984_s4 + $0x68] sm:$0xff]  }
 0x11c   : > { %1003 = vmatpush1.bf16.msra.mxu1 %v3259_v43  ;;  %v3336_v43 = vld [vmem:[%s3984_s4 + $0x28] sm:$0xff]  }
 0x11d   : > { %1004 = vmatprep.subr.bf16.mxu1 %v3267_v45  ;;  %v3759_v4 = vpop.permute.xlu1 %1981  ;;  %v3337_v45 = vld [vmem:[%s3984_s4 + $0x70] sm:$0xff]  }
 0x11e   : > { %1747 = vmatpush1.bf16.msra.mxu0 %v3262_v46  ;;  %vm1990_vm7 = vcmp.eq.s32.totalorder %v3657_v51, %v3759_v4  ;;  %v3338_v46 = vld [vmem:[%s3984_s4 + $0x30] sm:$0xff]  }
 0x11f   : > { %1916 = vmatprep.subr.bf16.mxu0 %v3270_v47  ;;  %v3339_v47 = vld [vmem:[%s3984_s4 + $0x78] sm:$0xff]  }
 0x120   : > { %1005 = vmatpush1.bf16.msra.mxu1 %v3265_v49  ;;  %v3340_v49 = vld [vmem:[%s3984_s4 + $0x38] sm:$0xff]  }
 0x121   : > { %2811 = vmatmul.mubr.msk.bf16.vlgmr.msra.gmra.mrb[0].mxu0 %vm2810_vm6, %v3466_v56  ;;  %1006 = vmatprep.subr.bf16.mxu1 %v3273_v53  ;;  %vm1989_vm6 = vcmp.eq.s32.totalorder %v3657_v51, %v3752_v60  ;;  %v2164_v60 = vshrl.u32 %v336_v48, 7 }
 0x122   : > { %1917 = vmatpush1.bf16.msra.mxu0 %v3268_v54  ;;  %1774 = vmatprep.mubr.bf16.mxu0 %v3457_v1  ;;  %v884_v8 = vpop.permute.xlu1 %883  ;;  %vm2858_vm8 = vmpackc.low %vm1990_vm7, %vm1989_vm6 }
 0x123   : > { %1918 = vmatprep.subr.bf16.mxu0 %v3276_v55  ;;  %vm888_vm13 = vcmp.eq.s32.totalorder %v3657_v51, %v884_v8 }
 0x124   : > { %1007 = vmatpush1.bf16.msra.mxu1 %v3271_v57  ;;  %vm2716_vm15 = vmpackc.low %vm888_vm13, %vm887_vm14 }
 0x125   : > { %1008 = vmatprep.subr.bf16.mxu1 %v3279_v59 }
 0x126   : > { %1919 = vmatpush1.bf16.msra.mxu0 %v3274_v44 }
 0x127   : > { %1920 = vmatprep.subr.bf16.mxu0 %v3282_v50  ;;  %v1988_v32 = vpop.permute.xlu1 %1987  ;;  %v2165_v50 = vsub.s32 0, %v2164_v60 }
 0x128   : > { %1009 = vmatpush1.bf16.msra.mxu1 %v3277_v61  ;;  %v2161_v61 = vld [vmem:[%s3983_s3] sm:$0x3] }
 0x129   : > { %1010 = vmatprep.subr.bf16.mxu1 %v3285_v62  ;;  %2813 = vmatmul.mubr.msk.bf16.gmra.mrb[4].mxu0 %vm2812_vm9, %v3466_v56  ;;  %vm1992_vm9 = vcmp.eq.s32.totalorder %v3657_v51, %v1988_v32  ;;  %v2169_v62 = vsub.s32 1, %v2164_v60 }
 0x12a   : > { %1921 = vmatpush1.bf16.msra.mxu0 %v3280_v63  ;;  %1948 = vmatprep.mubr.bf16.mxu0 %v3457_v1  ;;  %vm2860_vm11 = vmpackc.low %vm1992_vm9, %vm1991_vm10 }
 0x12b   : > { %1922 = vmatprep.subr.bf16.mxu0 %v3288_v2  ;;  %v2166_v2 = vrot.slane %v2161_v61, %v2165_v50 }
 0x12c   : > { %1011 = vmatpush1.bf16.msra.mxu1 %v3283_v3 }
 0x12d   : > { %2889 = vmatprep.subr.bf16.mxu1 %v3325_v34 }
 0x12e   : > { %1923 = vmatpush1.bf16.msra.mxu0 %v3286_v5  ;;  %v2170_v5 = vrot.slane %v2161_v61, %v2169_v62 }
 0x12f   : > { %2715 = vmatmul.mubr.msk.bf16.vlgmr.msra.gmra.mrb[0].mxu1 %vm2714_vm12, %v3466_v56  ;;  %1924 = vmatprep.subr.bf16.mxu0 %v3291_v6  ;;  %vm2377_vm12 = vcmp.lt.s32.totalorder %v3657_v51, 30 }
 0x130   : > { %1038 = vmatprep.mubr.bf16.mxu1 %v3457_v1  ;;  %2890 = vmatpush3.bf16.msra.mxu1 %v3326_v35 }
 0x131   : > { %2891 = vmatprep.subr.bf16.mxu1 %v3327_v36 }
 0x132   : > { %1925 = vmatpush1.bf16.msra.mxu0 %v3289_v7 }
 0x133   : > { %1926 = vmatprep.subr.bf16.mxu0 %v3294_v10 }
 0x136   : > { %1927 = vmatpush1.bf16.msra.mxu0 %v3292_v11 }
 0x137   : > { %2717 = vmatmul.mubr.msk.bf16.gmra.mrb[4].mxu1 %vm2716_vm15, %v3466_v56  ;;  %1928 = vmatprep.subr.bf16.mxu0 %v3297_v13 }
 0x13a   : > { %1929 = vmatpush1.bf16.msra.mxu0 %v3295_v14 }
 0x13b   : > { %1930 = vmatprep.subr.bf16.mxu0 %v3300_v15 }
 0x13e   : > { %1931 = vmatpush1.bf16.msra.mxu0 %v3298_v12 }
 0x13f   : > { %2100 = vmatprep.subr.bf16.mxu0 %v3303_v16 }
 0x141   : > { %2835 = vmatmul.mubr.msk.bf16.vlgmr.msra.gmra.mrb[0].mxu0 %vm2834_vm2, %v3466_v56 }
 0x142   : > { %2101 = vmatpush1.bf16.msra.mxu0 %v3301_v17  ;;  %1958 = vmatprep.mubr.bf16.mxu0 %v3457_v1 }
 0x143   : > { %2102 = vmatprep.subr.bf16.mxu0 %v3306_v19 }
 0x146   : > { %2103 = vmatpush1.bf16.msra.mxu0 %v3304_v20 }
 0x147   : > { %2104 = vmatprep.subr.bf16.mxu0 %v3309_v18 }
 0x149   : > { %2837 = vmatmul.mubr.msk.bf16.gmra.mrb[4].mxu0 %vm2836_vm5, %v3466_v56 }
 0x14a   : > { %2105 = vmatpush1.bf16.msra.mxu0 %v3307_v21  ;;  %2132 = vmatprep.mubr.bf16.mxu0 %v3457_v1 }
 0x14b   : > { %2106 = vmatprep.subr.bf16.mxu0 %v3312_v22 }
 0x14e   : > { %2107 = vmatpush1.bf16.msra.mxu0 %v3310_v23 }
 0x14f   : > { %2108 = vmatprep.subr.bf16.mxu0 %v3315_v24 }
 0x152   : > { %2109 = vmatpush1.bf16.msra.mxu0 %v3313_v25 }
 0x153   : > { %2110 = vmatprep.subr.bf16.mxu0 %v3318_v26 }
 0x156   : > { %2111 = vmatpush1.bf16.msra.mxu0 %v3316_v27 }
 0x157   : > { %2112 = vmatprep.subr.bf16.mxu0 %v3321_v28 }
 0x15a   : > { %2113 = vmatpush1.bf16.msra.mxu0 %v3319_v29 }
 0x15b   : > { %2114 = vmatprep.subr.bf16.mxu0 %v3324_v30  ;;  %v2862_v30 = vld [vmem:[%s3985_s5] ss:$0 sm:$0xff] }
 0x15e   : > { %2115 = vmatpush1.bf16.msra.mxu0 %v3322_v31 }
 0x161   : > { %2859 = vmatmul.mubr.msk.bf16.vlgmr.msra.gmra.mrb[0].mxu0 %vm2858_vm8, %v3466_v56 }
 0x162   : > { %2142 = vmatprep.mubr.bf16.mxu0 %v3457_v1  ;;  %v3328_v1 = vld [vmem:[%s3984_s4 + $0x8] sm:$0xff]  }
 0x163   : > { %2892 = vmatpush3.bf16.msra.mxu1 %v3328_v1 }
 0x169   : > { %2861 = vmatmul.mubr.msk.bf16.gmra.mrb[4].mxu0 %vm2860_vm11, %v3466_v56  ;;  %v3329_v56 = vld [vmem:[%s3984_s4 + $0x50] sm:$0xff]  }
 0x16a   : > { %2893 = vmatprep.subr.bf16.mxu1 %v3329_v56 }
 0x16b   : > { %2894 = vmatpush3.bf16.msra.mxu1 %v3330_v37 }
 0x16c   : > { %2895 = vmatprep.subr.bf16.mxu1 %v3331_v38 }
 0x16f   : > { %2896 = vmatpush3.bf16.msra.mxu1 %v3332_v39 }
 0x170   : > { %2897 = vmatprep.subr.bf16.mxu1 %v3333_v40 }
 0x173   : > { %2898 = vmatpush3.bf16.msra.mxu1 %v3334_v41 }
 0x174   : > { %2899 = vmatprep.subr.bf16.mxu1 %v3335_v42 }
 0x177   : > { %2900 = vmatpush3.bf16.msra.mxu1 %v3336_v43 }
 0x178   : > { %2901 = vmatprep.subr.bf16.mxu1 %v3337_v45 }
 0x17b   : > { %2902 = vmatpush3.bf16.msra.mxu1 %v3338_v46 }
 0x17c   : > { %2903 = vmatprep.subr.bf16.mxu1 %v3339_v47 }
 0x17f   : > { %2904 = vmatpush3.bf16.msra.mxu1 %v3340_v49  ;;  %v3874_v49 = vld [vmem:[%s322_s22 + $0x8] sm:$0xff] }
 0x202   : > { %v1030_v52 = vpop.f32.mrb[0].mxu1 }
 0x203   : > { %v1032_v53 = vpop.f32.mrb[1].mxu1 }
 0x204   : > { %v1034_v54 = vpop.f32.mrb[2].mxu1 }
 0x205   : > { %v1036_v55 = vpop.f32.mrb[3].mxu1 }
 0x20a   : > { %v1040_v57 = vpop.f32.mrb[4].mxu1 }
 0x20b   : > { %v1042_v58 = vpop.f32.mrb[5].mxu1 }
 0x20c   : > { %v1044_v59 = vpop.f32.mrb[6].mxu1 }
 0x20d   : > { %v1046_v44 = vpop.f32.mrb[7].mxu1 }
 0x234   : > { %v2134_v63 = vpop.f32.mrb[0].mxu0 }
 0x235   : > { %v2917_v0 = vadd.f32 %v2134_v63, %v1030_v52  ;;  %v2136_v3 = vpop.f32.mrb[1].mxu0  ;;  %v3877_v52 = vld [vmem:[%s322_s22 + $0x10] sm:$0xff] }
 0x236   : > { %v2918_v4 = vadd.f32 %v2136_v3, %v1032_v53  ;;  %v2138_v6 = vpop.f32.mrb[2].mxu0  ;;  %v3880_v53 = vld [vmem:[%s322_s22] sm:$0xff] }
 0x237   : > { %v2919_v7 = vadd.f32 %v2138_v6, %v1034_v54  ;;  %v2140_v8 = vpop.f32.mrb[3].mxu0  ;;  %v2173_v10 = vadd.f32 %v2917_v0, %v2166_v2 }
 0x238   : > { %v2920_v9 = vadd.f32 %v2140_v8, %v1036_v55  ;;  %v2174_v13 = vadd.f32 %v2918_v4, %v2170_v5  ;;  %v3885_v55 = vld [vmem:[%s322_s22 + $0x18] sm:$0xff] }
 0x239   : > { %v2175_v11 = vadd.f32 %v2919_v7, %v2166_v2 }
 0x23a   : > { %v2176_v48 = vadd.f32 %v2920_v9, %v2170_v5 }
 0x23b   : > { %v2181_v14 = vpack.c.bf16 %v2175_v11, %v2173_v10 }
 0x23c   : > { %v2144_v15 = vpop.f32.mrb[4].mxu0  ;;  %v2182_v12 = vpack.c.bf16 %v2176_v48, %v2174_v13 }
 0x23d   : > { %v2921_v16 = vadd.f32 %v2144_v15, %v1040_v57  ;;  %v2146_v17 = vpop.f32.mrb[5].mxu0 }
 0x23e   : > { %v2922_v19 = vadd.f32 %v2146_v17, %v1042_v58  ;;  %v2148_v20 = vpop.f32.mrb[6].mxu0  ;;  %2352 = vmatprep.mubr.bf16.mxu1 %v2182_v12 }
 0x23f   : > { %v2923_v18 = vadd.f32 %v2148_v20, %v1044_v59  ;;  %v2150_v21 = vpop.f32.mrb[7].mxu0  ;;  %2353 = vmatmul.mubr.bf16.vlgmr.msra.gmra.mrb[8].mxu1 %v2181_v14  ;;  %v2177_v23 = vadd.f32 %v2921_v16, %v2166_v2 }
 0x240   : > { %v2924_v22 = vadd.f32 %v2150_v21, %v1046_v44  ;;  %v2178_v25 = vadd.f32 %v2922_v19, %v2170_v5 }
 0x241   : > { %v2179_v24 = vadd.f32 %v2923_v18, %v2166_v2 }
 0x242   : > { %v2180_v26 = vadd.f32 %v2924_v22, %v2170_v5 }
 0x243   : > { %v2183_v27 = vpack.c.bf16 %v2179_v24, %v2177_v23 }
 0x244   : > { %v2184_v28 = vpack.c.bf16 %v2180_v26, %v2178_v25 }
 0x246   : > { %2360 = vmatprep.mubr.bf16.mxu1 %v2184_v28 }
 0x247   : > { %2361 = vmatmul.mubr.bf16.gmra.mrb[12].mxu1 %v2183_v27 }
 0x312   : > { %v2905_v29 = vpop.f32.mrb[8].mxu1 }
 0x313   : > { %v2906_v31 = vpop.f32.mrb[9].mxu1 }
 0x314   : > { %v2907_v32 = vadd.f32 %v2906_v31, %v2905_v29  ;;  %v2908_v33 = vpop.f32.mrb[10].mxu1 }
 0x315   : > { %v2909_v34 = vpop.f32.mrb[11].mxu1 }
 0x316   : > { %v3850_v35 = vadd.f32 %v2907_v32, %v2862_v30  ;;  %v2910_v36 = vadd.f32 %v2909_v34, %v2908_v33 }
 0x318   : > { %2369 = vst [vmem:[%s3852_s19] sm:$0xff] %v3850_v35  ;;  %v3856_v1 = vadd.f32 %v2910_v36, %v2862_v30  ;;  %v2378_v56 = vsel %vm2377_vm12, %v3850_v35, -1e+30 }
 0x319   : > { %2382 = vmax.xlane.f32.xlu1 %v2378_v56 }
 0x31a   : > { %2370 = vst [vmem:[%s3852_s19 + $0x8] sm:$0xff] %v3856_v1  ;;  %v2911_v37 = vpop.f32.mrb[12].mxu1  ;;  %v2379_v38 = vsel %vm2377_vm12, %v3856_v1, -1e+30 }
 0x31b   : > { %2384 = vmax.xlane.f32.xlu0 %v2379_v38  ;;  %v2912_v39 = vpop.f32.mrb[13].mxu1 }
 0x31c   : > { %v2913_v40 = vadd.f32 %v2912_v39, %v2911_v37  ;;  %v2914_v41 = vpop.f32.mrb[14].mxu1 }
 0x31d   : > { %v2915_v42 = vpop.f32.mrb[15].mxu1 }
 0x31e   : > { %v2363_v43 = vadd.f32 %v2913_v40, %v2862_v30  ;;  %v2916_v45 = vadd.f32 %v2915_v42, %v2914_v41 }
 0x320   : > { %2371 = vst [vmem:[%s3852_s19 + $0x10] sm:$0xff] %v2363_v43  ;;  %v2366_v46 = vadd.f32 %v2916_v45, %v2862_v30  ;;  %v2380_v47 = vsel %vm2377_vm12, %v2363_v43, -1e+30 }
 0x321   : > { %2386 = vmax.xlane.f32.xlu0 %v2380_v47 }
 0x322   : > { %2372 = vst [vmem:[%s3852_s19 + $0x18] sm:$0xff] %v2366_v46  ;;  %v2381_v54 = vsel %vm2377_vm12, %v2366_v46, -1e+30  ;;  %s3389_s19 = sshll.u32 %s3467_s16, 4  ;;  %s3390_s19 = int_to_ptr.vmem [resolvable:$false] %s3389_s19 }
 0x323   : > { %s3391_s20 = scalar_lea.vmem %s3390_s19, 1024  ;;  %p3392_p2 = scmp.lt.s32.totalorder %s3907_s23, %s3390_s19 }
 0x324   : > { %p3393_p3 = scmp.lt.s32.totalorder %s3391_s20, %s3385_s15 }
 0x326   : > { %p3394_p4 = por %p3393_p3, %p3392_p2 }
 0x328   : > { %p3395_p7 = pnand %p3394_p4, %p3388_p12 }
 0x32a   : > { %2426 = vperm.xlu1 %3084, %v3874_v49  }
 0x32e   : > { %2429 = vperm.xlu1 %3084, %v3877_v52  }
 0x337   : > { %2423 = vperm.xlu0 %3083, %v3880_v53  }
 0x352   : > { %2388 = vmax.xlane.f32.xlu1 %v2381_v54 }
 0x363   : > { %2432 = vperm.xlu1 %3084, %v3885_v55  }
 0x3a6   : > { %v3888_v57 = vpop.xlane.xlu1 %2382 }
 0x3a7   : > { %v2390_v58 = vsub.f32 %v2378_v56, %v3888_v57 }
 0x3a8   : > { %v3891_v59 = vpop.xlane.xlu0 %2384 }
 0x3a9   : > { %v2394_v44 = vmul.f32 1.442695, %v2390_v58  ;;  %v2391_v60 = vsub.f32 %v2379_v38, %v3891_v59 }
 0x3aa   : > { %v2427_v62 = vpop.permute.xlu1 %2426 }
 0x3ab   : > { %3341 = vpow2.f32 %v2394_v44  ;;  %v2396_v50 = vmul.f32 1.442695, %v2391_v60  ;;  %vm2435_vm15 = vcmp.eq.s32.totalorder %v3657_v51, %v2427_v62 }
 0x3ac   : > { %v2439_v14 = vsel %vm2435_vm15, %v3856_v1, 0.0 }
 0x3ad   : > { %3343 = vpow2.f32 %v2396_v50 }
 0x3ae   : > { %v3894_v61 = vpop.xlane.xlu0 %2386  ;;  %v2430_v3 = vpop.permute.xlu1 %2429 }
 0x3af   : > { %v2392_v63 = vsub.f32 %v2380_v47, %v3894_v61  ;;  %vm2436_vm13 = vcmp.eq.s32.totalorder %v3657_v51, %v2430_v3 }
 0x3b0   : > { %v2440_v5 = vsel %vm2436_vm13, %v2363_v43, 0.0 }
 0x3b1   : > { %v2398_v0 = vmul.f32 1.442695, %v2392_v63 }
 0x3b3   : > { %3345 = vpow2.f32 %v2398_v0 }
 0x3b5   : > { %v3342_v2 = vpop.eup %3341 }
 0x3b6   : > { %2402 = vadd.xlane.f32.xlu1 %v3342_v2  ;;  %v2424_v10 = vpop.permute.xlu0 %2423 }
 0x3b7   : > { %v3344_v4 = vpop.eup %3343  ;;  %vm2434_vm14 = vcmp.eq.s32.totalorder %v3657_v51, %v2424_v10 }
 0x3b8   : > { %2404 = vadd.xlane.f32.xlu0 %v3344_v4  ;;  %v2438_v13 = vsel %vm2434_vm14, %v3850_v35, 0.0 }
 0x3bc   : > { %2446 = vadd.xlane.f32.xlu0 %v2440_v5 }
 0x3bd   : > { %v3346_v6 = vpop.eup %3345 }
 0x3be   : > { %2406 = vadd.xlane.f32.xlu1 %v3346_v6 }
 0x3df   : > { %v3898_v7 = vpop.xlane.xlu1 %2388 }
 0x3e0   : > { %v2393_v8 = vsub.f32 %v2381_v54, %v3898_v7 }
 0x3e2   : > { %v2400_v9 = vmul.f32 1.442695, %v2393_v8 }
 0x3e3   : > { %v2433_v48 = vpop.permute.xlu1 %2432 }
 0x3e4   : > { %3347 = vpow2.f32 %v2400_v9  ;;  %vm2437_vm0 = vcmp.eq.s32.totalorder %v3657_v51, %v2433_v48 }
 0x3e5   : > { %v2441_v15 = vsel %vm2437_vm0, %v2366_v46, 0.0 }
 0x3ee   : > { %v3348_v11 = vpop.eup %3347 }
 0x3ef   : > { %2408 = vadd.xlane.f32.xlu1 %v3348_v11 }
 0x3f3   : > { %2442 = vadd.xlane.f32.xlu1 %v2438_v13 }
 0x3f7   : > { %2444 = vadd.xlane.f32.xlu1 %v2439_v14 }
 0x3fb   : > { %2448 = vadd.xlane.f32.xlu1 %v2441_v15 }
 0x3fc   : > { %3398 = shalt.err (!%p3395_p7)
}
 0x3fd   : > { %s3399_s28 = scalar_lea.hbm %s3913_s14, 512  ;;  %s3403_s22 = scalar_lea.hbm %s3986_s6, 1536 }
 0x3fe   : > { %p3400_p8 = scmp.ne.s32.totalorder %s3913_s14, %s3399_s28  ;;  %p3404_p1 = scmp.lt.u32.totalorder %s3913_s14, %s3986_s6 }
 0x3ff   : > { %p3405_p0 = scmp.lt.u32.totalorder %s3403_s22, %s3399_s28  ;;  %p3407_p6 = scmp.lt.u32.totalorder %s3399_s28, %s3913_s14 }
 0x400   : > { %p3401_p11 = pnand %p3400_p8, %p3998_p9 }
 0x401   : > { %p3406_p5 = por %p3405_p0, %p3404_p1 }
 0x402   : > { %p3402_p13 = pneg %p3401_p11 }
 0x403   : > { %p3408_p10 = por %p3407_p6, %p3406_p5 }
 0x405   : > { %p3409_p12 = pnand %p3408_p10, %p3402_p13 }
 0x407   : > { %3412 = shalt.err (!%p3409_p12)
}
 0x408   : > { %s3468_s9 = smov 128   ;;  %s3469_s15 = smov 8   ;;  %vm2452_vm1 = vcmp.ge.s32.totalorder %v3877_v52, 0  ;;  %v3470_v18 = vmov 0.0   ;;  %vm2470_vm2 = vcmask 7168   ;;  %vm2450_vm3 = vcmp.ge.s32.totalorder %v3880_v53, 0 }
 0x409   : > { %2993 = dma.vmem_to_hbm [thread:$0]  (%p3998_p9), %s3907_s23, 512, %s3913_s14, %s3917_s18, %s3468_s9, %s3468_s9, %s3469_s15   ;;  %v2881_v21 = vsel %vm2452_vm1, 1.0, %v3470_v18  ;;  %v2879_v31 = vsel %vm2450_vm3, 1.0, %v3470_v18  ;;  %vm2451_vm4 = vcmp.ge.s32.totalorder %v3874_v49, 0  ;;  %vm2453_vm5 = vcmp.ge.s32.totalorder %v3885_v55, 0 }
 0x40a   : > { %s3947_s20 = scalar_lea.vmem %s3987_s7, %s3597_s13  ;;  %v2880_v36 = vsel %vm2451_vm4, 1.0, %v3470_v18  ;;  %v2882_v41 = vsel %vm2453_vm5, 1.0, %v3470_v18 }
 0x443   : > { %v2403_v51 = vpop.xlane.xlu1 %2402 }
 0x445   : > { %v2405_v16 = vpop.xlane.xlu0 %2404 }
 0x449   : > { %v2447_v22 = vpop.xlane.xlu0 %2446 }
 0x44b   : > { %v2407_v12 = vpop.xlane.xlu1 %2406 }
 0x44c   : > { %3349 = vlog2.f32 %v2407_v12 }
 0x44d   : > { %3351 = vlog2.f32 %v2403_v51 }
 0x44e   : > { %3353 = vlog2.f32 %v2405_v16 }
 0x456   : > { %v3350_v17 = vpop.eup %3349 }
 0x457   : > { %v2415_v19 = vmul.f32 0.6931472, %v3350_v17  ;;  %v3352_v25 = vpop.eup %3351 }
 0x458   : > { %v2411_v26 = vmul.f32 0.6931472, %v3352_v25  ;;  %v3354_v27 = vpop.eup %3353 }
 0x459   : > { %v2420_v20 = vadd.f32 %v2415_v19, %v3894_v61  ;;  %v2413_v29 = vmul.f32 0.6931472, %v3354_v27 }
 0x45a   : > { %v2418_v30 = vadd.f32 %v2411_v26, %v3888_v57 }
 0x45b   : > { %v2464_v23 = vsub.f32 %v2420_v20, %v2447_v22  ;;  %v2419_v35 = vadd.f32 %v2413_v29, %v3891_v59 }
 0x45d   : > { %v2468_v24 = vmul.f32 %v2881_v21, %v2464_v23 }
 0x45f   : > { %2473 = vst.msk [vmem:[%s3947_s20 + $0x10] sm:$0xff] %vm2470_vm2, %v2468_v24 }
 0x47c   : > { %v2409_v28 = vpop.xlane.xlu1 %2408 }
 0x47d   : > { %3355 = vlog2.f32 %v2409_v28 }
 0x480   : > { %v2443_v32 = vpop.xlane.xlu1 %2442 }
 0x481   : > { %v2462_v33 = vsub.f32 %v2418_v30, %v2443_v32 }
 0x483   : > { %v2466_v34 = vmul.f32 %v2879_v31, %v2462_v33 }
 0x484   : > { %v2445_v1 = vpop.xlane.xlu1 %2444 }
 0x485   : > { %2471 = vst.msk [vmem:[%s3947_s20] sm:$0xff] %vm2470_vm2, %v2466_v34  ;;  %v2463_v56 = vsub.f32 %v2419_v35, %v2445_v1 }
 0x487   : > { %v3356_v37 = vpop.eup %3355  ;;  %v2467_v38 = vmul.f32 %v2880_v36, %v2463_v56 }
 0x488   : > { %v2417_v39 = vmul.f32 0.6931472, %v3356_v37  ;;  %v2449_v42 = vpop.xlane.xlu1 %2448 }
 0x489   : > { %2472 = vst.msk [vmem:[%s3947_s20 + $0x8] sm:$0xff] %vm2470_vm2, %v2467_v38 }
 0x48a   : > { %v2421_v40 = vadd.f32 %v2417_v39, %v3898_v7 }
 0x48c   : > { %v2465_v43 = vsub.f32 %v2421_v40, %v2449_v42 }
 0x48e   : > { %v2469_v45 = vmul.f32 %v2882_v41, %v2465_v43 }
 0x490   : > { %2474 = vst.msk [vmem:[%s3947_s20 + $0x18] sm:$0xff] %vm2470_vm2, %v2469_v45 }
 0x491 PF: > { %p3005_p9 = scmp.ge.s32.totalorder %s3451_s27, 2  ;;  %s2513_s11 = sand.u32 1, %s3439_s24  }
 0x492   : > { %p3999_p2 = scmp.ne.s32.totalorder %s3992_s12, 0  ;;  %s2514_s13 = scalar_lea.sflag [#allocation4], %s2513_s11 }
 0x494   : > { %p3000_p3 = pnand %p3005_p9, %p3999_p2 }
 0x496   : > { %3434 = dma.done.wait (!%p3000_p3), %s2514_s13, 512  }
 0x497   : > { %3436 = vsyncadd (!%p3000_p3), %s2514_s13, 4294966784  ;;  %p19_p4 = scmp.ge.s32.totalorder %s3536_s30, 5   ;;  %s4000_s24 = smov %s3443_s25 }
 0x498   : > { %s4001_s25 = smov %s3447_s26  ;;  %s4002_s26 = smov %s3547_s10 }
 0x499   : > { %s4003_s27 = smov %s3536_s30  ;;  %21 = sbr.rel (!%p19_p4) target bundleno = 4 (0x4), region = 108 }
 0x4a0   :  { %2527 = vsyncpa [#allocation3], 1 }
 0x4a1   :  { %2529 = vsyncpa [#allocation3 + $0x1], 1 }
 0x4a2   :  { %2530 = vsyncpa [#allocation4], 1 }
 0x4a3   :  { %2532 = vsyncpa [#allocation4 + $0x1], 1 }

</bundles_post_ra>
